<compile_context>
chip_gen: v7x
topology: tpu7x:2x2x1
jax: 0.10.0
libtpu: 0.0.40
codegen_flags: <defaults>
</compile_context>

<pallas_src>
import math
import functools
import jax
import jax.numpy as jnp
from jax import lax
from jax.experimental import pallas as pl
from jax.experimental.pallas import tpu as pltpu


# -----------------------------------------------------------------------------
# Chip-aware constants
# -----------------------------------------------------------------------------
def _detect_vmem_bytes():
    try:
        return int(pltpu.get_tpu_info().vmem_capacity_bytes)
    except Exception:
        return 64 << 20          # conservative (v7x per-TC)


def _device_kind():
    try:
        return jax.devices()[0].device_kind.lower()
    except Exception:
        return ""


_VMEM_BYTES = _detect_vmem_bytes()
_VMEM_LIMIT = int(min(_VMEM_BYTES * 3 // 4, 96 << 20))
_KIND = _device_kind()
_IS_V5E = ("v5 lite" in _KIND) or ("v5e" in _KIND) or ("v5litepod" in _KIND)
_TN_MAX = 128 if _IS_V5E else 256          # v5e's 4x128 MXU gains nothing at 256
_TM_CAP = 512 if _VMEM_BYTES <= (64 << 20) else 1024


def _round_up(x, m):
    return (x + m - 1) // m * m


def _pick_spatial_tile(n, align, cap):
    """Largest divisor of n that is a multiple of `align` and <= cap; else n."""
    if n <= cap:
        return n
    t = (cap // align) * align
    while t >= align:
        if n % t == 0:
            return t
        t -= align
    return n


def _pick_tile_m(mp, cap):
    d = min(cap, mp)
    d -= d % 8
    while d >= 8:
        if mp % d == 0:
            return d
        d -= 8
    return 8


# -----------------------------------------------------------------------------
# Shared Pallas MXU matmul (bias + ReLU fused, bf16 operands, f32 accumulation)
# -----------------------------------------------------------------------------
def _matmul_kernel(a_ref, b_ref, bias_ref, o_ref, acc_ref, *, apply_relu):
    @pl.when(pl.program_id(2) == 0)
    def _():
        acc_ref[...] = jnp.zeros_like(acc_ref)

    acc_ref[...] += jnp.dot(a_ref[...], b_ref[...],
                            preferred_element_type=jnp.float32)

    @pl.when(pl.program_id(2) == pl.num_programs(2) - 1)
    def _():
        r = acc_ref[...] + bias_ref[...]
        if apply_relu:
            r = jnp.maximum(r, 0.0)
        o_ref[...] = r.astype(o_ref.dtype)


def pallas_matmul(a, b, bias=None, relu=False, out_dtype=jnp.bfloat16):
    """[M,K] @ [K,N] -> out_dtype [M,N]; bias (per column) + ReLU fused."""
    M, K = a.shape
    K2, N = b.shape
    assert K == K2
    a = a.astype(jnp.bfloat16)
    b = b.astype(jnp.bfloat16)

    # --- M tiling: divisor of round_up(M,8); no activation-side padding unless
    #     M itself is not a multiple of 8 (rare, tiny pad only).
    Mp = _round_up(M, 8)
    tm = _pick_tile_m(Mp, _TM_CAP)
    if tm < 64 and Mp > 4 * _TM_CAP:          # awkward large M: pad instead
        Mp = _round_up(M, 256)
        tm = 256
    if Mp != M:
        a = jnp.pad(a, ((0, Mp - M), (0, 0)))

    # --- K tiling: split only when K is a 128-multiple, else one full-dim step
    if K % 128 == 0:
        tk = max(d for d in (512, 256, 128) if K % d == 0)
    else:
        tk = K

    # --- N tiling: 256 on >=v6e when it divides, 128-multiples otherwise,
    #     full-dim (no padding, no output slice) for small / odd N.
    if N % 128 == 0:
        tn = 256 if (N % 256 == 0 and _TN_MAX >= 256) else 128
    else:
        tn = N

    if bias is None:
        bias_row = jnp.zeros((1, N), jnp.float32)
    else:
        bias_row = bias.astype(jnp.float32).reshape(1, N)

    out = pl.pallas_call(
        functools.partial(_matmul_kernel, apply_relu=relu),
        out_shape=jax.ShapeDtypeStruct((Mp, N), out_dtype),
        grid=(Mp // tm, N // tn, K // tk),
        in_specs=[pl.BlockSpec((tm, tk), lambda i, j, k: (i, k)),
                  pl.BlockSpec((tk, tn), lambda i, j, k: (k, j)),
                  pl.BlockSpec((1, tn), lambda i, j, k: (0, j))],
        out_specs=pl.BlockSpec((tm, tn), lambda i, j, k: (i, j)),
        scratch_shapes=[pltpu.VMEM((tm, tn), jnp.float32)],
        compiler_params=pltpu.CompilerParams(
            dimension_semantics=("parallel", "parallel", "arbitrary"),
            vmem_limit_bytes=_VMEM_LIMIT),
    )(a, b, bias_row)
    if Mp != M:
        out = out[:M]
    return out


# -----------------------------------------------------------------------------
# Implicit-GEMM stride-1 3-D conv (no HBM im2col)
# -----------------------------------------------------------------------------
def _conv3d_stride1_kernel(x_ref, w_ref, b_ref, o_ref, acc_ref,
                           *, kh, kw, Ho, Wo, C, apply_relu):
    dz = pl.program_id(2)

    @pl.when(dz == 0)
    def _():
        acc_ref[...] = jnp.zeros_like(acc_ref)

    xs = x_ref[0, 0]                                   # [Hp, Wp, C] bf16
    part = None
    for t in range(kh * kw):
        dy, dx = divmod(t, kw)
        win = xs[dy:dy + Ho, dx:dx + Wo, :].reshape(Ho * Wo, C)
        d = jnp.dot(win, w_ref[0, t * C:(t + 1) * C, :],
                    preferred_element_type=jnp.float32)
        part = d if part is None else part + d
    acc_ref[...] += part

    @pl.when(dz == pl.num_programs(2) - 1)
    def _():
        r = acc_ref[...] + b_ref[...]
        if apply_relu:
            r = jnp.maximum(r, 0.0)
        o_ref[0, 0] = r.reshape(Ho, Wo, -1).astype(o_ref.dtype)


# -----------------------------------------------------------------------------
# Group-wise correlation kernel (no D-fold x broadcast; bf16 HBM operands)
# -----------------------------------------------------------------------------
def _gwc_kernel(x_ref, y_ref, d_ref, g_ref, o_ref, *, width):
    y = y_ref[0].astype(jnp.float32)               # [D, t, C]
    x = x_ref[0].astype(jnp.float32)               # [t, C]  (broadcast over D)
    dsp = d_ref[0]                                 # [D, t] f32
    D, t, C = y.shape
    hw0 = pl.program_id(1) * t
    col = (hw0 + lax.broadcasted_iota(jnp.int32, (D, t), 1)) % width
    invalid = col.astype(jnp.float32) < dsp        # reference zeroes x there
    prod = jnp.where(invalid[:, :, None], 0.0, x[None] * y)
    res = jnp.dot(prod.reshape(D * t, C).astype(jnp.bfloat16), g_ref[...],
                  preferred_element_type=jnp.float32)
    o_ref[0] = res.reshape(D, t, -1).astype(o_ref.dtype)


def gwc_volume_pallas(x, y_warped, drs, num_groups):
    """x: [B,H,W,C] bf16; y_warped: [B,D,H,W,C] bf16; drs: [B,D,H,W] f32."""
    B, D, H, W, C = y_warped.shape
    G = num_groups
    cg = C // G
    HW = H * W
    per_hw = (D * C + C) * 2 + D * 4 + D * G * 2
    cap = max(128, (4 << 20) // max(per_hw, 1))
    t_hw = _pick_spatial_tile(HW, 128, cap)

    c_idx = jnp.arange(C) // cg
    gmat = (c_idx[:, None] == jnp.arange(G)[None, :]).astype(jnp.float32) / cg

    xr = x.astype(jnp.bfloat16).reshape(B, HW, C)
    yr = y_warped.astype(jnp.bfloat16).reshape(B, D, HW, C)
    dr = drs.astype(jnp.float32).reshape(B, D, HW)

    out = pl.pallas_call(
        functools.partial(_gwc_kernel, width=W),
        out_shape=jax.ShapeDtypeStruct((B, D, HW, G), jnp.bfloat16),
        grid=(B, HW // t_hw),
        in_specs=[pl.BlockSpec((1, t_hw, C), lambda b, s: (b, s, 0)),
                  pl.BlockSpec((1, D, t_hw, C), lambda b, s: (b, 0, s, 0)),
                  pl.BlockSpec((1, D, t_hw), lambda b, s: (b, 0, s)),
                  pl.BlockSpec((C, G), lambda b, s: (0, 0))],
        out_specs=pl.BlockSpec((1, D, t_hw, G), lambda b, s: (b, 0, s, 0)),
        compiler_params=pltpu.CompilerParams(
            dimension_semantics=("parallel", "parallel"),
            vmem_limit_bytes=_VMEM_LIMIT),
    )(xr, yr, dr, gmat.astype(jnp.bfloat16))
    return out.reshape(B, D, H, W, G)


# -----------------------------------------------------------------------------
# Fused softmax + disparity regression (disp values rebuilt in-kernel)
# -----------------------------------------------------------------------------
def _softmax_disp_kernel(c_ref, dmin_ref, ditv_ref, o_ref):
    c = c_ref[0].astype(jnp.float32)               # [D, th, tw]
    m = jnp.max(c, axis=0, keepdims=True)
    e = jnp.exp(c - m)
    denom = jnp.sum(e, axis=0)                     # [th, tw]
    didx = lax.broadcasted_iota(jnp.float32, c.shape, 0)
    dvals = dmin_ref[0][None] + didx * ditv_ref[0][None]
    num = jnp.sum(e * dvals, axis=0)
    o_ref[0] = num / denom                         # exact reciprocal


def softmax_disparity_regression(cost, cur_min, new_itv):
    """cost: [B,D,H,W] (bf16 at the HBM boundary); cur_min/new_itv: [B,H,W]."""
    B, D, H, W = cost.shape
    cost = cost.astype(jnp.bfloat16)
    cur_min = cur_min.astype(jnp.float32)
    new_itv = new_itv.astype(jnp.float32)

    tw = _pick_spatial_tile(W, 128, 2048)
    per_row = D * tw * 2 + tw * 12
    cap_h = max(8, (6 << 20) // max(per_row, 1))
    th = _pick_spatial_tile(H, 8, cap_h)

    return pl.pallas_call(
        _softmax_disp_kernel,
        out_shape=jax.ShapeDtypeStruct((B, H, W), jnp.float32),
        grid=(B, H // th, W // tw),
        in_specs=[pl.BlockSpec((1, D, th, tw), lambda b, i, j: (b, 0, i, j)),
                  pl.BlockSpec((1, th, tw), lambda b, i, j: (b, i, j)),
                  pl.BlockSpec((1, th, tw), lambda b, i, j: (b, i, j))],
        out_specs=pl.BlockSpec((1, th, tw), lambda b, i, j: (b, i, j)),
        compiler_params=pltpu.CompilerParams(
            dimension_semantics=("parallel", "parallel", "parallel"),
            vmem_limit_bytes=_VMEM_LIMIT),
    )(cost, cur_min, new_itv)


# -----------------------------------------------------------------------------
# Conv building blocks (channels-last everywhere)
# -----------------------------------------------------------------------------
_BN_EPS = 1e-5
# Eval-mode BatchNorm with fresh stats (mean=0, var=1, gamma=1, beta=0)
# == multiply by 1/sqrt(1+eps); folded into the conv weights below.
# TODO(synk): with real trained parameters fold the actual running stats
# (scale AND shift) into conv weight/bias instead of this identity-stats scale.
BN_SCALE = 1.0 / math.sqrt(1.0 + _BN_EPS)


def relu(x):
    return jnp.maximum(x, 0.0)


def conv2d(x, w, stride=1, padding=0, dilation=1, bias=None,
           scale=1.0, relu_out=False, out_dtype=jnp.bfloat16):
    """NHWC conv2d. x: [B,H,W,C]; w: [O,Cin,kh,kw] (torch layout)."""
    B, H, W, C = x.shape
    O, _, kh, kw = w.shape
    Ho = (H + 2 * padding - dilation * (kh - 1) - 1) // stride + 1
    Wo = (W + 2 * padding - dilation * (kw - 1) - 1) // stride + 1
    xp = jnp.pad(x.astype(jnp.bfloat16),
                 ((0, 0), (padding, padding), (padding, padding), (0, 0)))
    if kh == 1 and kw == 1:
        col = xp[:, ::stride, ::stride, :].reshape(B * Ho * Wo, C)
    else:
        # TODO(synk): 2-D convs still use a (channels-last bf16) im2col; the
        # 3-D convs were the dominant cost and got the implicit-GEMM kernel.
        cols = []
        for i in range(kh):
            for j in range(kw):
                hs, ws = i * dilation, j * dilation
                cols.append(xp[:, hs:hs + (Ho - 1) * stride + 1:stride,
                                   ws:ws + (Wo - 1) * stride + 1:stride, :])
        col = jnp.concatenate(cols, axis=-1).reshape(B * Ho * Wo, kh * kw * C)
    wmat = (w * scale).transpose(2, 3, 1, 0).reshape(kh * kw * C, O)
    out = pallas_matmul(col, wmat, bias=bias, relu=relu_out, out_dtype=out_dtype)
    return out.reshape(B, Ho, Wo, O)


def conv3d(x, w, stride=1, padding=0, bias=None, scale=1.0, relu_out=False,
           out_dtype=jnp.bfloat16):
    """NDHWC conv3d. x: [B,D,H,W,C]; w: [O,Cin,kd,kh,kw] (torch layout)."""
    B, D, H, W, C = x.shape
    O, _, kd, kh, kw = w.shape
    x = x.astype(jnp.bfloat16)

    if kd == 1 and kh == 1 and kw == 1 and padding == 0 and stride == 1:
        col = x.reshape(B * D * H * W, C)
        wmat = (w * scale).reshape(O, C).T
        out = pallas_matmul(col, wmat, bias=bias, relu=relu_out,
                            out_dtype=out_dtype)
        return out.reshape(B, D, H, W, O)

    Do = (D + 2 * padding - kd) // stride + 1
    Ho = (H + 2 * padding - kh) // stride + 1
    Wo = (W + 2 * padding - kw) // stride + 1
    xp = jnp.pad(x, ((0, 0), (padding, padding), (padding, padding),
                     (padding, padding), (0, 0)))
    Hp, Wp = H + 2 * padding, W + 2 * padding
    w_sc = (w * scale).astype(jnp.float32)

    if stride != 1:
        # TODO(synk): extend the implicit-GEMM kernel to strided windows so the
        # remaining (small) stride-2 hourglass convs drop their im2col too.
        cols = []
        for a in range(kd):
            for b2 in range(kh):
                for c in range(kw):
                    cols.append(xp[:, a:a + (Do - 1) * stride + 1:stride,
                                       b2:b2 + (Ho - 1) * stride + 1:stride,
                                       c:c + (Wo - 1) * stride + 1:stride, :])
        col = jnp.concatenate(cols, axis=-1).reshape(
            B * Do * Ho * Wo, kd * kh * kw * C)
        wmat = w_sc.transpose(2, 3, 4, 1, 0).reshape(kd * kh * kw * C, O)
        out = pallas_matmul(col, wmat, bias=bias, relu=relu_out,
                            out_dtype=out_dtype)
        return out.reshape(B, Do, Ho, Wo, O)

    # stride-1 implicit-GEMM path (no HBM im2col): the padded HxWxC slice for
    # the current input depth is the VMEM-resident block; kd is the reduction
    # grid axis and the 9 (kh,kw) taps are accumulated in-kernel.
    # TODO(synk): H-tile with a manual-DMA halo for very large resolutions on
    # v7x's 64 MiB VMEM.
    wmat = w_sc.transpose(2, 3, 4, 1, 0).reshape(
        kd, kh * kw * C, O).astype(jnp.bfloat16)
    bias_row = (jnp.zeros((1, O), jnp.float32) if bias is None
                else bias.astype(jnp.float32).reshape(1, O))
    kern = functools.partial(_conv3d_stride1_kernel, kh=kh, kw=kw,
                             Ho=Ho, Wo=Wo, C=C, apply_relu=relu_out)
    return pl.pallas_call(
        kern,
        out_shape=jax.ShapeDtypeStruct((B, Do, Ho, Wo, O), out_dtype),
        grid=(B, Do, kd),
        in_specs=[pl.BlockSpec((1, 1, Hp, Wp, C),
                               lambda b, do, dz: (b, do + dz, 0, 0, 0)),
                  pl.BlockSpec((1, kh * kw * C, O),
                               lambda b, do, dz: (dz, 0, 0)),
                  pl.BlockSpec((1, O), lambda b, do, dz: (0, 0))],
        out_specs=pl.BlockSpec((1, 1, Ho, Wo, O),
                               lambda b, do, dz: (b, do, 0, 0, 0)),
        scratch_shapes=[pltpu.VMEM((Ho * Wo, O), jnp.float32)],
        compiler_params=pltpu.CompilerParams(
            dimension_semantics=("parallel", "parallel", "arbitrary"),
            vmem_limit_bytes=_VMEM_LIMIT),
    )(xp, wmat, bias_row)


def conv_transpose3d(x, w, scale=1.0):
    """ConvTranspose3d(k=3, stride=2, padding=1, output_padding=1, bias=False).

    All 8 sub-pixel output phases are fused into one GEMM: K = 8*Cin taps,
    N = 8*Cout (per-phase weight columns, zero-filled for unused taps), so the
    MXU sees dense 256/512-wide N tiles and a single im2col build.
    x: [B,D,H,W,Cin] (NDHWC); w: [Cin,Cout,3,3,3] (torch layout).
    """
    B, D, H, W, C = x.shape
    Cout = w.shape[1]
    xp = jnp.pad(x.astype(jnp.bfloat16),
                 ((0, 0), (0, 1), (0, 1), (0, 1), (0, 0)))
    cols = []
    for od in (0, 1):
        for oh in (0, 1):
            for ow in (0, 1):
                cols.append(xp[:, od:od + D, oh:oh + H, ow:ow + W, :])
    col = jnp.concatenate(cols, axis=-1).reshape(B * D * H * W, 8 * C)

    wsc = (w * scale).astype(jnp.float32)
    zeros_blk = jnp.zeros((C, Cout), jnp.float32)
    phase_cols = []
    for pd in (0, 1):
        for ph in (0, 1):
            for pw in (0, 1):
                rows = []
                for od in (0, 1):
                    for oh in (0, 1):
                        for ow in (0, 1):
                            ok = ((od == 0 or pd == 1) and
                                  (oh == 0 or ph == 1) and
                                  (ow == 0 or pw == 1))
                            if ok:
                                wd = 1 if pd == 0 else (2 if od == 0 else 0)
                                wh = 1 if ph == 0 else (2 if oh == 0 else 0)
                                ww = 1 if pw == 0 else (2 if ow == 0 else 0)
                                rows.append(wsc[:, :, wd, wh, ww])
                            else:
                                rows.append(zeros_blk)
                phase_cols.append(jnp.concatenate(rows, axis=0))   # [8C, Cout]
    wbig = jnp.concatenate(phase_cols, axis=1)                      # [8C, 8Cout]

    out = pallas_matmul(col, wbig, out_dtype=jnp.bfloat16)          # [M, 8Cout]
    out = out.reshape(B, D, H, W, 2, 2, 2, Cout)
    out = out.transpose(0, 1, 4, 2, 5, 3, 6, 7).reshape(
        B, 2 * D, 2 * H, 2 * W, Cout)
    return out


def upsample_nearest2x(x):                   # NHWC
    return jnp.repeat(jnp.repeat(x, 2, axis=1), 2, axis=2)


def interp_trilinear(x, size):
    """F.interpolate(x[:,None], size, mode='trilinear', align_corners=False)
    on a [B, D, H, W] tensor."""
    B, D, H, W = x.shape
    Do, Ho, Wo = size

    def src(o, n):
        s = (jnp.arange(o, dtype=jnp.float32) + 0.5) * (n / o) - 0.5
        return jnp.maximum(s, 0.0)

    def idx_w(s, n):
        i0 = jnp.minimum(jnp.floor(s).astype(jnp.int32), n - 1)
        i1 = jnp.minimum(i0 + 1, n - 1)
        w1 = s - i0.astype(jnp.float32)
        return i0, i1, 1.0 - w1, w1

    d0, d1, wd0, wd1 = idx_w(src(Do, D), D)
    h0, h1, wh0, wh1 = idx_w(src(Ho, H), H)
    w0, w1_, ww0, ww1 = idx_w(src(Wo, W), W)
    out = jnp.zeros((B, Do, Ho, Wo), jnp.float32)
    xf = x.astype(jnp.float32)
    for di, wd in ((d0, wd0), (d1, wd1)):
        for hi, wh in ((h0, wh0), (h1, wh1)):
            for wi, ww in ((w0, ww0), (w1_, ww1)):
                v = xf[:, di][:, :, hi][:, :, :, wi]
                wgt = wd[:, None, None] * wh[None, :, None] * ww[None, None, :]
                out = out + v * wgt[None]
    return out


def grid_sample_bilinear_nhwc(img, grid):
    """F.grid_sample (bilinear, zeros padding, align_corners=False) on NHWC.
    Gathers run in bf16 to halve HBM bytes."""
    B, H, W, C = img.shape
    gx, gy = grid[..., 0], grid[..., 1]
    ix = ((gx + 1.0) * W - 1.0) * 0.5
    iy = ((gy + 1.0) * H - 1.0) * 0.5
    x0 = jnp.floor(ix)
    y0 = jnp.floor(iy)
    x1 = x0 + 1.0
    y1 = y0 + 1.0
    w00 = (x1 - ix) * (y1 - iy)
    w01 = (x1 - ix) * (iy - y0)
    w10 = (ix - x0) * (y1 - iy)
    w11 = (ix - x0) * (iy - y0)

    def sample(imgb, yy, xx):
        valid = (yy >= 0) & (yy <= H - 1) & (xx >= 0) & (xx <= W - 1)
        yc = jnp.clip(yy, 0, H - 1).astype(jnp.int32)
        xc = jnp.clip(xx, 0, W - 1).astype(jnp.int32)
        return imgb[yc, xc] * valid[..., None].astype(imgb.dtype)

    def per_batch(imgb, x0b, x1b, y0b, y1b, a, b, c, d):
        out = (sample(imgb, y0b, x0b).astype(jnp.float32) * a[..., None] +
               sample(imgb, y1b, x0b).astype(jnp.float32) * b[..., None] +
               sample(imgb, y0b, x1b).astype(jnp.float32) * c[..., None] +
               sample(imgb, y1b, x1b).astype(jnp.float32) * d[..., None])
        return out.astype(jnp.bfloat16)

    return jax.vmap(per_batch)(img, x0, x1, y0, y1, w00, w01, w10, w11)


# -----------------------------------------------------------------------------
# Parameters (deterministic init, matching the module's shape definitions)
# -----------------------------------------------------------------------------
class ParamGen:
    def __init__(self, seed):
        self.key = jax.random.PRNGKey(seed)
        self.n = 0

    def _k(self):
        self.n += 1
        return jax.random.fold_in(self.key, self.n)

    def conv2(self, cin, cout, k):
        std = math.sqrt(2.0 / (k * k * cout))
        return jax.random.normal(self._k(), (cout, cin, k, k), jnp.float32) * std

    def conv3(self, cin, cout, k):
        std = math.sqrt(2.0 / (k * k * k * cout))
        return jax.random.normal(self._k(), (cout, cin, k, k, k), jnp.float32) * std

    def convt3(self, cin, cout, k):
        std = math.sqrt(2.0 / (k * k * k * cout))
        return jax.random.normal(self._k(), (cin, cout, k, k, k), jnp.float32) * std


def init_feature_extraction(pg, concat_ch=12):
    p = {}
    p['fa'] = [pg.conv2(1, 32, 3), pg.conv2(32, 32, 3)]
    p['fb'] = pg.conv2(32, 32, 3)

    def make_layer(cin, planes, blocks, stride):
        layer = []
        ds = pg.conv2(cin, planes, 1) if (stride != 1 or cin != planes) else None
        layer.append({'c1': pg.conv2(cin, planes, 3),
                      'c2': pg.conv2(planes, planes, 3), 'ds': ds})
        for _ in range(1, blocks):
            layer.append({'c1': pg.conv2(planes, planes, 3),
                          'c2': pg.conv2(planes, planes, 3), 'ds': None})
        return layer

    p['layer1'] = make_layer(32, 32, 3, 1)
    p['layer2'] = make_layer(32, 64, 16, 2)
    p['layer3'] = make_layer(64, 128, 3, 1)
    p['layer4'] = make_layer(128, 128, 3, 1)
    p['out1_cat'] = [pg.conv2(320, 128, 3), pg.conv2(128, concat_ch, 1)]
    p['inner1'] = (pg.conv2(32, 320, 1), jnp.zeros((320,), jnp.float32))
    p['inner2'] = (pg.conv2(32, 320, 1), jnp.zeros((320,), jnp.float32))
    p['out2'] = pg.conv2(320, 160, 3)
    p['out2_cat'] = pg.conv2(160, concat_ch // 2, 1)
    p['out3'] = pg.conv2(320, 80, 3)
    p['out3_cat'] = pg.conv2(80, concat_ch // 4, 1)
    return p


def init_hourglass(pg, c):
    return {'conv1': pg.conv3(c, 2 * c, 3), 'conv2': pg.conv3(2 * c, 2 * c, 3),
            'conv3': pg.conv3(2 * c, 4 * c, 3), 'conv4': pg.conv3(4 * c, 4 * c, 3),
            'conv5': pg.convt3(4 * c, 2 * c, 3), 'conv6': pg.convt3(2 * c, c, 3),
            'redir1': pg.conv3(c, c, 1), 'redir2': pg.conv3(2 * c, 2 * c, 1)}


def init_cost_aggregation(pg, in_ch, base=32):
    return {'dres0': [pg.conv3(in_ch, base, 3), pg.conv3(base, base, 3)],
            'dres1': [pg.conv3(base, base, 3), pg.conv3(base, base, 3)],
            'hg': [init_hourglass(pg, base) for _ in range(3)],
            'classif3': [pg.conv3(base, base, 3), pg.conv3(base, 1, 3)]}


# -----------------------------------------------------------------------------
# Forward passes (channels-last)
# -----------------------------------------------------------------------------
def basic_block(x, blk, stride, dilation):
    pad = dilation                 # convbn: padding = dilation if dilation>1 else 1
    out = conv2d(x, blk['c1'], stride, pad, dilation,
                 scale=BN_SCALE, relu_out=True)
    out = conv2d(out, blk['c2'], 1, pad, dilation, scale=BN_SCALE)
    if blk['ds'] is not None:
        x = conv2d(x, blk['ds'], stride, 0, 1, scale=BN_SCALE)
    return out + x


def run_layer(x, layer, stride, dilation):
    for i, blk in enumerate(layer):
        x = basic_block(x, blk, stride if i == 0 else 1, dilation)
    return x


def feature_extraction_fwd(p, x_nchw):
    x = x_nchw.transpose(0, 2, 3, 1).astype(jnp.bfloat16)   # one-time NHWC cast
    h = conv2d(x, p['fa'][0], 1, 1, 1, scale=BN_SCALE, relu_out=True)
    output_s1 = conv2d(h, p['fa'][1], 1, 1, 1, scale=BN_SCALE, relu_out=True)
    h = conv2d(output_s1, p['fb'], 2, 1, 1, scale=BN_SCALE, relu_out=True)
    output_s2 = run_layer(h, p['layer1'], 1, 1)
    l2 = run_layer(output_s2, p['layer2'], 2, 1)
    l3 = run_layer(l2, p['layer3'], 1, 1)
    l4 = run_layer(l3, p['layer4'], 1, 2)
    feat = jnp.concatenate([l2, l3, l4], axis=-1)            # [B, H/4, W/4, 320]
    out_cat = conv2d(conv2d(feat, p['out1_cat'][0], 1, 1, 1,
                            scale=BN_SCALE, relu_out=True),
                     p['out1_cat'][1], 1, 0, 1)
    msfeat = {'stage1': {'gwc_feature': feat, 'concat_feature': out_cat}}
    intra = upsample_nearest2x(feat) + conv2d(output_s2, p['inner1'][0], 1, 0, 1,
                                              bias=p['inner1'][1])
    out = conv2d(intra, p['out2'], 1, 1, 1)
    msfeat['stage2'] = {'gwc_feature': out,
                        'concat_feature': conv2d(out, p['out2_cat'], 1, 0, 1)}
    intra = upsample_nearest2x(intra) + conv2d(output_s1, p['inner2'][0], 1, 0, 1,
                                               bias=p['inner2'][1])
    out = conv2d(intra, p['out3'], 1, 1, 1)
    msfeat['stage3'] = {'gwc_feature': out,
                        'concat_feature': conv2d(out, p['out3_cat'], 1, 0, 1)}
    return msfeat


def build_cost_volume(ref_fea, tgt_fea, drs, ndisp, num_groups):
    """Channels-last cost volume [B, D, H, W, G + 2*C1]."""
    # TODO(synk): fuse the disparity warp into the GWC kernel (in-VMEM shifted
    # reads, stage-1 constant-shift fast path) instead of the XLA gather.
    xg = ref_fea['gwc_feature']
    yg = tgt_fea['gwc_feature']
    B, H, W, _ = xg.shape
    mh = jnp.broadcast_to(jnp.arange(H, dtype=jnp.float32).reshape(1, 1, H, 1),
                          (B, ndisp, H, W))
    mw = jnp.broadcast_to(jnp.arange(W, dtype=jnp.float32).reshape(1, 1, 1, W),
                          (B, ndisp, H, W))
    coords_x = (mw - drs) / ((W - 1.0) / 2.0) - 1.0
    coords_y = mh / ((H - 1.0) / 2.0) - 1.0
    grid = jnp.stack([coords_x, coords_y], axis=4).reshape(B, ndisp * H, W, 2)

    yg_warp = grid_sample_bilinear_nhwc(yg, grid).reshape(B, ndisp, H, W, -1)
    gwc = gwc_volume_pallas(xg, yg_warp, drs, num_groups)

    xc = ref_fea['concat_feature']
    yc = tgt_fea['concat_feature']
    yc_warp = grid_sample_bilinear_nhwc(yc, grid).reshape(B, ndisp, H, W, -1)
    mask = (mw < drs)[..., None]
    xc_b = jnp.where(mask, 0.0,
                     jnp.broadcast_to(xc[:, None], yc_warp.shape)).astype(jnp.bfloat16)
    return jnp.concatenate([gwc, xc_b, yc_warp], axis=-1)


def hourglass_fwd(p, x):
    c1 = conv3d(x, p['conv1'], 2, 1, scale=BN_SCALE, relu_out=True)
    c2 = conv3d(c1, p['conv2'], 1, 1, scale=BN_SCALE, relu_out=True)
    c3 = conv3d(c2, p['conv3'], 2, 1, scale=BN_SCALE, relu_out=True)
    c4 = conv3d(c3, p['conv4'], 1, 1, scale=BN_SCALE, relu_out=True)
    c5 = relu(conv_transpose3d(c4, p['conv5'], scale=BN_SCALE) +
              conv3d(c2, p['redir2'], 1, 0, scale=BN_SCALE))
    c6 = relu(conv_transpose3d(c5, p['conv6'], scale=BN_SCALE) +
              conv3d(x, p['redir1'], 1, 0, scale=BN_SCALE))
    return c6


def cost_aggregation_fwd(p, cost, fine_d, fine_h, fine_w, cur_min, new_itv):
    h = conv3d(cost, p['dres0'][0], 1, 1, scale=BN_SCALE, relu_out=True)
    cost0 = conv3d(h, p['dres0'][1], 1, 1, scale=BN_SCALE, relu_out=True)
    h = conv3d(cost0, p['dres1'][0], 1, 1, scale=BN_SCALE, relu_out=True)
    h = conv3d(h, p['dres1'][1], 1, 1, scale=BN_SCALE)
    cost0 = h + cost0
    out1 = hourglass_fwd(p['hg'][0], cost0)
    out2 = hourglass_fwd(p['hg'][1], out1)
    out3 = hourglass_fwd(p['hg'][2], out2)
    c3 = conv3d(out3, p['classif3'][0], 1, 1, scale=BN_SCALE, relu_out=True)
    c3 = conv3d(c3, p['classif3'][1], 1, 1, out_dtype=jnp.float32)  # [B,D',H',W',1]
    c3 = c3[..., 0]
    # TODO(synk): fuse this trilinear upsample into the softmax/regression
    # Pallas kernel (read the coarse volume, interpolate in-VMEM) instead of
    # materializing the expanded [B, FineD, H, W] tensor.
    c3 = interp_trilinear(c3, (fine_d, fine_h, fine_w))
    # TODO(synk): training-mode branch (classif0/1/2 + pred0..pred2) not
    # emitted; eval-mode semantics only.
    return softmax_disparity_regression(c3.astype(jnp.bfloat16), cur_min, new_itv)


# -----------------------------------------------------------------------------
# CascadeNet
# -----------------------------------------------------------------------------
NDISPS = [48, 24, 12]
DISP_INTERVAL = [4.0, 2.0, 1.0]
NUM_GROUPS = [40, 20, 10]
STAGE_SCALE = [4, 2, 1]
CONCAT_CH = 12
MAXDISP = 192.0


def init_cascadenet(seed=0):
    pg = ParamGen(seed)
    fe = init_feature_extraction(pg, CONCAT_CH)
    out_channels = [(320, CONCAT_CH), (160, CONCAT_CH // 2), (80, CONCAT_CH // 4)]
    in_chs = [NUM_GROUPS[i] + c1 * 2 for i, (_, c1) in enumerate(out_channels)]
    cas = [init_cost_aggregation(pg, ic, 32) for ic in in_chs]
    return {'fe': fe, 'cost_agg': cas}


def get_disp_range_params(cur_disp, ndisp, interval, B, H, W, max_disp=192.0):
    """Returns (cur_min, new_interval), both [B, H, W]; disp_range_samples is
    cur_min + d * new_interval.  using_ns=False path.
    TODO(synk): using_ns neighbourhood-search branch not implemented."""
    if cur_disp is None:
        cur_disp = jnp.zeros((B, H, W), jnp.float32)
        cur_min = jnp.clip(cur_disp - ndisp / 2 * interval, 0.0, None)
        cur_max = jnp.clip(cur_min + (ndisp - 1) * interval, None, max_disp)
    else:
        # Matches the reference: no clamp in the cur_disp branch (stages 2/3).
        cur_min = cur_disp - ndisp / 2 * interval
        cur_max = cur_disp + ndisp / 2 * interval
    new_itv = (cur_max - cur_min) / (ndisp - 1)
    return cur_min, new_itv


def cascadenet_forward(params, left, right):
    B, _, H, W = left.shape
    ref_ms = feature_extraction_fwd(params['fe'], left)
    tgt_ms = feature_extraction_fwd(params['fe'], right)
    outputs = {}
    pred = None
    for s in range(3):
        ndisp, interval, scale = NDISPS[s], DISP_INTERVAL[s], STAGE_SCALE[s]
        cur_disp = None if pred is None else pred   # 'detach' is a no-op here
        cur_min, new_itv = get_disp_range_params(cur_disp, ndisp, interval,
                                                 B, H, W, MAXDISP)
        arange = jnp.arange(ndisp, dtype=jnp.float32).reshape(1, ndisp, 1, 1)
        drs = cur_min[:, None] + arange * new_itv[:, None]      # [B, ndisp, H, W]
        drs_stage = interp_trilinear(
            drs / scale, (ndisp // scale, H // scale, W // scale))
        cost = build_cost_volume(ref_ms['stage%d' % (s + 1)],
                                 tgt_ms['stage%d' % (s + 1)],
                                 drs_stage, ndisp // scale, NUM_GROUPS[s])
        pred3 = cost_aggregation_fwd(params['cost_agg'][s], cost,
                                     ndisp, H, W, cur_min, new_itv)
        pred = pred3
        outputs['stage%d' % (s + 1)] = {'pred3': pred3, 'pred': pred}
    return outputs


# -----------------------------------------------------------------------------
if __name__ == "__main__":
    B, H, W = 2, 16, 16
    key = jax.random.PRNGKey(0)
    k1, k2 = jax.random.split(key)
    left = jax.random.normal(k1, (B, 1, H, W), jnp.float32)
    right = jax.random.normal(k2, (B, 1, H, W), jnp.float32)

    params = init_cascadenet(seed=0)
    outs = cascadenet_forward(params, left, right)

    pred = outs['stage3']['pred']
    jax.block_until_ready(pred)

    for s in ('stage1', 'stage2', 'stage3'):
        assert outs[s]['pred3'].shape == (B, H, W)
        assert bool(jnp.all(jnp.isfinite(outs[s]['pred3'])))
    print("KERNEL_OK")
</pallas_src>

<mosaic_0001>
module attributes {stable_mosaic.version = 11 : i64} {
  func.func @_matmul_kernel(%arg0: i32, %arg1: i32, %arg2: i32, %arg3: memref<512x9xbf16, #tpu.memory_space<vmem>>, %arg4: memref<9x32xbf16, #tpu.memory_space<vmem>>, %arg5: memref<1x32xf32, #tpu.memory_space<vmem>>, %arg6: memref<512x32xbf16, #tpu.memory_space<vmem>>, %arg7: memref<512x32xf32, #tpu.memory_space<vmem>>) attributes {dimension_semantics = [#tpu.dimension_semantics<parallel>, #tpu.dimension_semantics<parallel>, #tpu.dimension_semantics<arbitrary>], iteration_bounds = array<i64: 1, 1, 1>, scalar_prefetch = 0 : i64, scratch_operands = 1 : i64, tpu.core_type = #tpu.core_type<tc>, window_params = [{transform_indices = @transform_0, window_bounds = array<i64: 512, 9>}, {transform_indices = @transform_1, window_bounds = array<i64: 9, 32>}, {transform_indices = @transform_2, window_bounds = array<i64: 1, 32>}, {transform_indices = @transform_3, window_bounds = array<i64: 512, 32>}]} {
    %c0_i32 = arith.constant 0 : i32
    %0 = arith.cmpi eq, %arg2, %c0_i32 : i32
    %1 = arith.extui %0 : i1 to i32
    %c0_i32_0 = arith.constant 0 : i32
    %2 = arith.cmpi ne, %1, %c0_i32_0 : i32
    scf.if %2 {
      %cst_10 = arith.constant 0.000000e+00 : f32
      %12 = vector.broadcast %cst_10 : f32 to vector<512x32xf32>
      %c0_11 = arith.constant 0 : index
      %c0_12 = arith.constant 0 : index
      %13 = vector.load %arg7[%c0_11, %c0_12] : memref<512x32xf32, #tpu.memory_space<vmem>>, vector<512x32xf32>
      tpu.vector_store %arg7[%c0_11, %c0_12], %12 {strides = array<i32>} : memref<512x32xf32, #tpu.memory_space<vmem>>, vector<512x32xf32>,
    } else {
    }
    %c0 = arith.constant 0 : index
    %c0_1 = arith.constant 0 : index
    %3 = vector.load %arg7[%c0, %c0_1] : memref<512x32xf32, #tpu.memory_space<vmem>>, vector<512x32xf32>
    %c0_2 = arith.constant 0 : index
    %c0_3 = arith.constant 0 : index
    %4 = vector.load %arg3[%c0_2, %c0_3] : memref<512x9xbf16, #tpu.memory_space<vmem>>, vector<512x9xbf16>
    %c0_4 = arith.constant 0 : index
    %c0_5 = arith.constant 0 : index
    %5 = vector.load %arg4[%c0_4, %c0_5] : memref<9x32xbf16, #tpu.memory_space<vmem>>, vector<9x32xbf16>
    %cst = arith.constant dense<0.000000e+00> : vector<512x32xf32>
    %6 = tpu.matmul %4, %5, %cst {dimension_numbers = #tpu.dot_dimension_numbers<[1], [0], [0], [1], [0, 0, 1, 1], [], []>} : vector<512x9xbf16>, vector<9x32xbf16>, vector<512x32xf32> -> vector<512x32xf32>
    %7 = arith.addf %3, %6 : vector<512x32xf32>
    %c0_6 = arith.constant 0 : index
    %c0_7 = arith.constant 0 : index
    %8 = vector.load %arg7[%c0_6, %c0_7] : memref<512x32xf32, #tpu.memory_space<vmem>>, vector<512x32xf32>
    tpu.vector_store %arg7[%c0_6, %c0_7], %7 {strides = array<i32>} : memref<512x32xf32, #tpu.memory_space<vmem>>, vector<512x32xf32>,
    %c0_i32_8 = arith.constant 0 : i32
    %9 = arith.cmpi eq, %arg2, %c0_i32_8 : i32
    %10 = arith.extui %9 : i1 to i32
    %c0_i32_9 = arith.constant 0 : i32
    %11 = arith.cmpi ne, %10, %c0_i32_9 : i32
    scf.if %11 {
      %c0_10 = arith.constant 0 : index
      %c0_11 = arith.constant 0 : index
      %12 = vector.load %arg7[%c0_10, %c0_11] : memref<512x32xf32, #tpu.memory_space<vmem>>, vector<512x32xf32>
      %c0_12 = arith.constant 0 : index
      %c0_13 = arith.constant 0 : index
      %13 = vector.load %arg5[%c0_12, %c0_13] : memref<1x32xf32, #tpu.memory_space<vmem>>, vector<1x32xf32>
      %14 = vector.broadcast %13 : vector<1x32xf32> to vector<512x32xf32>
      %15 = arith.addf %12, %14 : vector<512x32xf32>
      %cst_14 = arith.constant 0.000000e+00 : f32
      %16 = vector.broadcast %cst_14 : f32 to vector<512x32xf32>
      %17 = arith.maximumf %15, %16 : vector<512x32xf32>
      %18 = arith.truncf %17 : vector<512x32xf32> to vector<512x32xbf16>
      %c0_15 = arith.constant 0 : index
      %c0_16 = arith.constant 0 : index
      %19 = vector.load %arg6[%c0_15, %c0_16] : memref<512x32xbf16, #tpu.memory_space<vmem>>, vector<512x32xbf16>
      tpu.vector_store %arg6[%c0_15, %c0_16], %18 {strides = array<i32>} : memref<512x32xbf16, #tpu.memory_space<vmem>>, vector<512x32xbf16>,
    } else {
    }
    return
  }
  func.func @transform_0(%arg0: i32, %arg1: i32, %arg2: i32) -> (i32, i32) {
    %c0_i32 = arith.constant 0 : i32
    return %arg0, %arg2 : i32, i32
  }
  func.func @transform_1(%arg0: i32, %arg1: i32, %arg2: i32) -> (i32, i32) {
    %c0_i32 = arith.constant 0 : i32
    return %arg2, %arg1 : i32, i32
  }
  func.func @transform_2(%arg0: i32, %arg1: i32, %arg2: i32) -> (i32, i32) {
    %c0_i32 = arith.constant 0 : i32
    %c0_i32_0 = arith.constant 0 : i32
    return %c0_i32, %arg1 : i32, i32
  }
  func.func @transform_3(%arg0: i32, %arg1: i32, %arg2: i32) -> (i32, i32) {
    %c0_i32 = arith.constant 0 : i32
    return %arg0, %arg1 : i32, i32
  }
}

</mosaic_0001>

<bundles_post_ra>
// kernel: tpu_custom_call.1
= control target key start
LH: loop header
LB: loop body
LE: loop exit
PB: predicated region body
PF: predicated region fallthrough
CT: control target
= control target key end

     0   :  { %vm476_vm0 = vcmask 1043456   ;;  %vm477_vm1 = vcmask 1044480   ;;  %vm379_vm2 = vcmask 72704   ;;  %v1759_v1 = vmov 65535   ;;  %s2443_s1 = inlined_call_operand.vmem [shape: bf16[9,32], index: 1, kind: input, shape index: {}]   ;;  %s2444_s0 = inlined_call_operand.vmem [shape: bf16[512,9], index: 0, kind: input, shape index: {}]   ;;  %s2445_s2 = inlined_call_operand.vmem [shape: f32[1,32], index: 2, kind: input, shape index: {}]   ;;  %s2446_s3 = inlined_call_operand.vmem [shape: bf16[512,32], index: 3, kind: output, shape index: {}]  }
   0x1   :  { %v1725_v0 = vld [vmem:[%s2443_s1] sm:$0x1f]   ;;  %v478_v2 = vsel %vm476_vm0, 4294967295, %v1759_v1  ;;  %v1796_v7 = vld [vmem:[%s2444_s0 + $0x8] sm:$0xff]   ;;  %vm19_vm3 = vcmask 261120   ;;  %v1809_v9 = vld [vmem:[%s2444_s0 + $0x10] sm:$0xff]  }
   0x2   :  { %v1726_v3 = vld [vmem:[%s2444_s0] sm:$0xff]   ;;  %v479_v4 = vsel %vm477_vm1, %v478_v2, 0  ;;  %v1802_v8 = vld [vmem:[%s2444_s0 + $0x88] sm:$0xff]   ;;  %v1760_v10 = vmov 0.0   ;;  %v1731_v11 = vld [vmem:[%s2444_s0 + $0x90] sm:$0xff]   ;;  %vm1359_vm4 = vcmask 257024  }
   0x3   :  { %v1727_v5 = vld [vmem:[%s2444_s0 + $0x80] sm:$0xff]   ;;  %v1790_v6 = vand.u32 %v1725_v0, %v479_v4  ;;  %1657 = vmatprep.mubr.msk.bf16.mxu0 %vm379_vm2, %v1726_v3  ;;  %22 = vst.msk [vmem:[#allocation2 + $0x10] sm:$0xff] %vm19_vm3, %v1760_v10  ;;  %20 = vst.msk [vmem:[#allocation2] sm:$0xff] %vm19_vm3, %v1760_v10  ;;  %v1732_v12 = vld [vmem:[%s2444_s0 + $0x18] sm:$0xff]  }
   0x4   :  { %1689 = vmatprep.mubr.msk.bf16.mxu1 %vm379_vm2, %v1727_v5  ;;  %21 = vst.msk [vmem:[#allocation2 + $0x8] sm:$0xff] %vm19_vm3, %v1760_v10  ;;  %23 = vst.msk [vmem:[#allocation2 + $0x18] sm:$0xff] %vm19_vm3, %v1760_v10  ;;  %v1733_v13 = vld [vmem:[%s2444_s0 + $0x98] sm:$0xff]   ;;  %v1734_v14 = vld [vmem:[%s2444_s0 + $0x20] sm:$0xff]  }
   0x5   :  { %1655 = vmatprep.subr.bf16.mxu0 %v1790_v6  ;;  %1721 = vmatprep.subr.bf16.mxu1 %v1790_v6  ;;  %24 = vst.msk [vmem:[#allocation2 + $0x20] sm:$0xff] %vm19_vm3, %v1760_v10  ;;  %25 = vst.msk [vmem:[#allocation2 + $0x28] sm:$0xff] %vm19_vm3, %v1760_v10  ;;  %v1735_v15 = vld [vmem:[%s2444_s0 + $0xa0] sm:$0xff]   ;;  %v1736_v16 = vld [vmem:[%s2444_s0 + $0x28] sm:$0xff]  }
   0x6   :  { %26 = vst.msk [vmem:[#allocation2 + $0x30] sm:$0xff] %vm19_vm3, %v1760_v10  ;;  %27 = vst.msk [vmem:[#allocation2 + $0x38] sm:$0xff] %vm19_vm3, %v1760_v10  ;;  %1656 = vmatpush3.bf16.msra.mxu0 %v1790_v6  ;;  %1722 = vmatpush3.bf16.msra.mxu1 %v1790_v6  ;;  %v1737_v17 = vld [vmem:[%s2444_s0 + $0xa8] sm:$0xff]   ;;  %v1738_v18 = vld [vmem:[%s2444_s0 + $0x30] sm:$0xff]  }
   0x7   :  { %28 = vst.msk [vmem:[#allocation2 + $0x40] sm:$0xff] %vm19_vm3, %v1760_v10  ;;  %29 = vst.msk [vmem:[#allocation2 + $0x48] sm:$0xff] %vm19_vm3, %v1760_v10  ;;  %v1739_v19 = vld [vmem:[%s2444_s0 + $0xb0] sm:$0xff]   ;;  %v1740_v20 = vld [vmem:[%s2444_s0 + $0x38] sm:$0xff]  }
   0x8   :  { %30 = vst.msk [vmem:[#allocation2 + $0x50] sm:$0xff] %vm19_vm3, %v1760_v10  ;;  %31 = vst.msk [vmem:[#allocation2 + $0x58] sm:$0xff] %vm19_vm3, %v1760_v10  ;;  %v1741_v21 = vld [vmem:[%s2444_s0 + $0xb8] sm:$0xff]   ;;  %v1742_v22 = vld [vmem:[%s2444_s0 + $0x40] sm:$0xff]  }
   0x9   :  { %32 = vst.msk [vmem:[#allocation2 + $0x60] sm:$0xff] %vm19_vm3, %v1760_v10  ;;  %33 = vst.msk [vmem:[#allocation2 + $0x68] sm:$0xff] %vm19_vm3, %v1760_v10  ;;  %1658 = vmatmul.mubr.msk.bf16.vlgmr.msra.gmra.mrb[0].mxu0 %vm379_vm2, %v1796_v7  ;;  %1690 = vmatmul.mubr.msk.bf16.vlgmr.msra.gmra.mrb[0].mxu1 %vm379_vm2, %v1802_v8  ;;  %v1743_v23 = vld [vmem:[%s2444_s0 + $0xc0] sm:$0xff]   ;;  %v1744_v24 = vld [vmem:[%s2444_s0 + $0x48] sm:$0xff]  }
   0xa   :  { %34 = vst.msk [vmem:[#allocation2 + $0x70] sm:$0xff] %vm19_vm3, %v1760_v10  ;;  %35 = vst.msk [vmem:[#allocation2 + $0x78] sm:$0xff] %vm19_vm3, %v1760_v10  ;;  %1661 = vmatprep.mubr.msk.bf16.mxu0 %vm379_vm2, %v1809_v9  ;;  %1693 = vmatprep.mubr.msk.bf16.mxu1 %vm379_vm2, %v1731_v11  ;;  %v1745_v25 = vld [vmem:[%s2444_s0 + $0xc8] sm:$0xff]   ;;  %v1746_v26 = vld [vmem:[%s2444_s0 + $0x50] sm:$0xff]  }
   0xb   :  { %36 = vst.msk [vmem:[#allocation2 + $0x80] sm:$0xff] %vm19_vm3, %v1760_v10  ;;  %37 = vst.msk [vmem:[#allocation2 + $0x88] sm:$0xff] %vm19_vm3, %v1760_v10  ;;  %v1747_v27 = vld [vmem:[%s2444_s0 + $0xd0] sm:$0xff]   ;;  %v1748_v28 = vld [vmem:[%s2444_s0 + $0x58] sm:$0xff]  }
   0xc   :  { %38 = vst.msk [vmem:[#allocation2 + $0x90] sm:$0xff] %vm19_vm3, %v1760_v10  ;;  %39 = vst.msk [vmem:[#allocation2 + $0x98] sm:$0xff] %vm19_vm3, %v1760_v10  ;;  %v1749_v29 = vld [vmem:[%s2444_s0 + $0xd8] sm:$0xff]   ;;  %v1750_v30 = vld [vmem:[%s2444_s0 + $0x60] sm:$0xff]  }
   0xd   :  { %40 = vst.msk [vmem:[#allocation2 + $0xa0] sm:$0xff] %vm19_vm3, %v1760_v10  ;;  %41 = vst.msk [vmem:[#allocation2 + $0xa8] sm:$0xff] %vm19_vm3, %v1760_v10  ;;  %v1751_v31 = vld [vmem:[%s2444_s0 + $0xe0] sm:$0xff]   ;;  %v1752_v32 = vld [vmem:[%s2444_s0 + $0x68] sm:$0xff]  }
   0xe   :  { %42 = vst.msk [vmem:[#allocation2 + $0xb0] sm:$0xff] %vm19_vm3, %v1760_v10  ;;  %43 = vst.msk [vmem:[#allocation2 + $0xb8] sm:$0xff] %vm19_vm3, %v1760_v10  ;;  %v1753_v33 = vld [vmem:[%s2444_s0 + $0xe8] sm:$0xff]   ;;  %v1754_v34 = vld [vmem:[%s2444_s0 + $0x70] sm:$0xff]  }
   0xf   :  { %44 = vst.msk [vmem:[#allocation2 + $0xc0] sm:$0xff] %vm19_vm3, %v1760_v10  ;;  %45 = vst.msk [vmem:[#allocation2 + $0xc8] sm:$0xff] %vm19_vm3, %v1760_v10  ;;  %v1755_v35 = vld [vmem:[%s2444_s0 + $0xf0] sm:$0xff]   ;;  %v1756_v36 = vld [vmem:[%s2444_s0 + $0x78] sm:$0xff]  }
  0x10   :  { %46 = vst.msk [vmem:[#allocation2 + $0xd0] sm:$0xff] %vm19_vm3, %v1760_v10  ;;  %47 = vst.msk [vmem:[#allocation2 + $0xd8] sm:$0xff] %vm19_vm3, %v1760_v10  ;;  %v1757_v37 = vld [vmem:[%s2444_s0 + $0xf8] sm:$0xff]   ;;  %v86_v38 = vld [vmem:[#allocation2 + $0x10] sm:$0xff] }
  0x11   :  { %48 = vst.msk [vmem:[#allocation2 + $0xe0] sm:$0xff] %vm19_vm3, %v1760_v10  ;;  %49 = vst.msk [vmem:[#allocation2 + $0xe8] sm:$0xff] %vm19_vm3, %v1760_v10  ;;  %1662 = vmatmul.mubr.msk.bf16.gmra.mrb[4].mxu0 %vm379_vm2, %v1732_v12  ;;  %1694 = vmatmul.mubr.msk.bf16.gmra.mrb[4].mxu1 %vm379_vm2, %v1733_v13  ;;  %v84_v40 = vld [vmem:[#allocation2] sm:$0xff]  ;;  %v87_v44 = vld [vmem:[#allocation2 + $0x18] sm:$0xff] }
  0x12   :  { %50 = vst.msk [vmem:[#allocation2 + $0xf0] sm:$0xff] %vm19_vm3, %v1760_v10  ;;  %51 = vst.msk [vmem:[#allocation2 + $0xf8] sm:$0xff] %vm19_vm3, %v1760_v10  ;;  %1665 = vmatprep.mubr.msk.bf16.mxu0 %vm379_vm2, %v1734_v14  ;;  %1697 = vmatprep.mubr.msk.bf16.mxu1 %vm379_vm2, %v1735_v15  ;;  %v85_v50 = vld [vmem:[#allocation2 + $0x8] sm:$0xff]  ;;  %v90_v62 = vld [vmem:[#allocation2 + $0x30] sm:$0xff] }
  0x13   :  { %52 = vst.msk [vmem:[#allocation2 + $0x100] sm:$0xff] %vm19_vm3, %v1760_v10  ;;  %53 = vst.msk [vmem:[#allocation2 + $0x108] sm:$0xff] %vm19_vm3, %v1760_v10  ;;  %v88_v0 = vld [vmem:[#allocation2 + $0x20] sm:$0xff]  ;;  %v91_v5 = vld [vmem:[#allocation2 + $0x38] sm:$0xff] }
  0x14   :  { %54 = vst.msk [vmem:[#allocation2 + $0x110] sm:$0xff] %vm19_vm3, %v1760_v10  ;;  %55 = vst.msk [vmem:[#allocation2 + $0x118] sm:$0xff] %vm19_vm3, %v1760_v10  ;;  %v2066_v2 = vld [vmem:[%s2445_s2] ss:$0 sm:$0xff]  ;;  %v89_v11 = vld [vmem:[#allocation2 + $0x28] sm:$0xff] }
  0x15   :  { %56 = vst.msk [vmem:[#allocation2 + $0x120] sm:$0xff] %vm19_vm3, %v1760_v10  ;;  %57 = vst.msk [vmem:[#allocation2 + $0x128] sm:$0xff] %vm19_vm3, %v1760_v10 }
  0x16   :  { %58 = vst.msk [vmem:[#allocation2 + $0x130] sm:$0xff] %vm19_vm3, %v1760_v10  ;;  %59 = vst.msk [vmem:[#allocation2 + $0x138] sm:$0xff] %vm19_vm3, %v1760_v10 }
  0x17   :  { %60 = vst.msk [vmem:[#allocation2 + $0x140] sm:$0xff] %vm19_vm3, %v1760_v10  ;;  %61 = vst.msk [vmem:[#allocation2 + $0x148] sm:$0xff] %vm19_vm3, %v1760_v10 }
  0x18   :  { %62 = vst.msk [vmem:[#allocation2 + $0x150] sm:$0xff] %vm19_vm3, %v1760_v10  ;;  %63 = vst.msk [vmem:[#allocation2 + $0x158] sm:$0xff] %vm19_vm3, %v1760_v10 }
  0x19   :  { %64 = vst.msk [vmem:[#allocation2 + $0x160] sm:$0xff] %vm19_vm3, %v1760_v10  ;;  %65 = vst.msk [vmem:[#allocation2 + $0x168] sm:$0xff] %vm19_vm3, %v1760_v10  ;;  %1666 = vmatmul.mubr.msk.bf16.gmra.mrb[8].mxu0 %vm379_vm2, %v1736_v16  ;;  %1698 = vmatmul.mubr.msk.bf16.gmra.mrb[8].mxu1 %vm379_vm2, %v1737_v17 }
  0x1a   :  { %66 = vst.msk [vmem:[#allocation2 + $0x170] sm:$0xff] %vm19_vm3, %v1760_v10  ;;  %67 = vst.msk [vmem:[#allocation2 + $0x178] sm:$0xff] %vm19_vm3, %v1760_v10  ;;  %1669 = vmatprep.mubr.msk.bf16.mxu0 %vm379_vm2, %v1738_v18  ;;  %1701 = vmatprep.mubr.msk.bf16.mxu1 %vm379_vm2, %v1739_v19  ;;  %v116_v41 = vld [vmem:[#allocation2 + $0x100] sm:$0xff]  ;;  %v117_v51 = vld [vmem:[#allocation2 + $0x108] sm:$0xff] }
  0x1b   :  { %68 = vst.msk [vmem:[#allocation2 + $0x180] sm:$0xff] %vm19_vm3, %v1760_v10  ;;  %69 = vst.msk [vmem:[#allocation2 + $0x188] sm:$0xff] %vm19_vm3, %v1760_v10  ;;  %v118_v39 = vld [vmem:[#allocation2 + $0x110] sm:$0xff]  ;;  %v119_v45 = vld [vmem:[#allocation2 + $0x118] sm:$0xff] }
  0x1c   :  { %70 = vst.msk [vmem:[#allocation2 + $0x190] sm:$0xff] %vm19_vm3, %v1760_v10  ;;  %71 = vst.msk [vmem:[#allocation2 + $0x198] sm:$0xff] %vm19_vm3, %v1760_v10  ;;  %v120_v1 = vld [vmem:[#allocation2 + $0x120] sm:$0xff]  ;;  %v121_v12 = vld [vmem:[#allocation2 + $0x128] sm:$0xff] }
  0x1d   :  { %72 = vst.msk [vmem:[#allocation2 + $0x1a0] sm:$0xff] %vm19_vm3, %v1760_v10  ;;  %73 = vst.msk [vmem:[#allocation2 + $0x1a8] sm:$0xff] %vm19_vm3, %v1760_v10  ;;  %v122_v63 = vld [vmem:[#allocation2 + $0x130] sm:$0xff]  ;;  %v123_v6 = vld [vmem:[#allocation2 + $0x138] sm:$0xff] }
  0x1e   :  { %74 = vst.msk [vmem:[#allocation2 + $0x1b0] sm:$0xff] %vm19_vm3, %v1760_v10  ;;  %75 = vst.msk [vmem:[#allocation2 + $0x1b8] sm:$0xff] %vm19_vm3, %v1760_v10 }
  0x1f   :  { %76 = vst.msk [vmem:[#allocation2 + $0x1c0] sm:$0xff] %vm19_vm3, %v1760_v10  ;;  %77 = vst.msk [vmem:[#allocation2 + $0x1c8] sm:$0xff] %vm19_vm3, %v1760_v10 }
  0x20   :  { %78 = vst.msk [vmem:[#allocation2 + $0x1d0] sm:$0xff] %vm19_vm3, %v1760_v10  ;;  %79 = vst.msk [vmem:[#allocation2 + $0x1d8] sm:$0xff] %vm19_vm3, %v1760_v10 }
  0x21   :  { %80 = vst.msk [vmem:[#allocation2 + $0x1e0] sm:$0xff] %vm19_vm3, %v1760_v10  ;;  %81 = vst.msk [vmem:[#allocation2 + $0x1e8] sm:$0xff] %vm19_vm3, %v1760_v10  ;;  %1670 = vmatmul.mubr.msk.bf16.gmra.mrb[12].mxu0 %vm379_vm2, %v1740_v20  ;;  %1702 = vmatmul.mubr.msk.bf16.gmra.mrb[12].mxu1 %vm379_vm2, %v1741_v21 }
  0x22   :  { %82 = vst.msk [vmem:[#allocation2 + $0x1f0] sm:$0xff] %vm19_vm3, %v1760_v10  ;;  %83 = vst.msk [vmem:[#allocation2 + $0x1f8] sm:$0xff] %vm19_vm3, %v1760_v10  ;;  %1673 = vmatprep.mubr.msk.bf16.mxu0 %vm379_vm2, %v1742_v22  ;;  %1705 = vmatprep.mubr.msk.bf16.mxu1 %vm379_vm2, %v1743_v23 }
  0x29   :  { %1674 = vmatmul.mubr.msk.bf16.gmra.mrb[16].mxu0 %vm379_vm2, %v1744_v24  ;;  %1706 = vmatmul.mubr.msk.bf16.gmra.mrb[16].mxu1 %vm379_vm2, %v1745_v25 }
  0x2a   :  { %1677 = vmatprep.mubr.msk.bf16.mxu0 %vm379_vm2, %v1746_v26  ;;  %1709 = vmatprep.mubr.msk.bf16.mxu1 %vm379_vm2, %v1747_v27 }
  0x31   :  { %1678 = vmatmul.mubr.msk.bf16.gmra.mrb[20].mxu0 %vm379_vm2, %v1748_v28  ;;  %1710 = vmatmul.mubr.msk.bf16.gmra.mrb[20].mxu1 %vm379_vm2, %v1749_v29 }
  0x32   :  { %1681 = vmatprep.mubr.msk.bf16.mxu0 %vm379_vm2, %v1750_v30  ;;  %1713 = vmatprep.mubr.msk.bf16.mxu1 %vm379_vm2, %v1751_v31 }
  0x39   :  { %1682 = vmatmul.mubr.msk.bf16.gmra.mrb[24].mxu0 %vm379_vm2, %v1752_v32  ;;  %1714 = vmatmul.mubr.msk.bf16.gmra.mrb[24].mxu1 %vm379_vm2, %v1753_v33 }
  0x3a   :  { %1685 = vmatprep.mubr.msk.bf16.mxu0 %vm379_vm2, %v1754_v34  ;;  %1717 = vmatprep.mubr.msk.bf16.mxu1 %vm379_vm2, %v1755_v35 }
  0x41   :  { %1686 = vmatmul.mubr.msk.bf16.gmra.mrb[28].mxu0 %vm379_vm2, %v1756_v36  ;;  %1718 = vmatmul.mubr.msk.bf16.gmra.mrb[28].mxu1 %vm379_vm2, %v1757_v37 }
  0xdc   :  { %v1659_v42 = vpop.f32.mrb[0].mxu0  ;;  %v1691_v43 = vpop.f32.mrb[0].mxu1 }
  0xdd   :  { %v774_v46 = vadd.f32 %v1659_v42, %v86_v38  ;;  %v806_v47 = vadd.f32 %v1691_v43, %v118_v39  ;;  %v517_v48 = vpop.f32.mrb[1].mxu0  ;;  %v645_v49 = vpop.f32.mrb[1].mxu1  ;;  %v94_v43 = vld [vmem:[#allocation2 + $0x50] sm:$0xff] }
  0xde   :  { %v772_v52 = vadd.f32 %v517_v48, %v84_v40  ;;  %v804_v53 = vadd.f32 %v645_v49, %v116_v41  ;;  %v1660_v54 = vpop.f32.mrb[2].mxu0  ;;  %v1692_v55 = vpop.f32.mrb[2].mxu1  ;;  %v92_v49 = vld [vmem:[#allocation2 + $0x40] sm:$0xff] }
  0xdf   :  { %839 = vst.msk [vmem:[#allocation2 + $0x10] sm:$0xff] %vm19_vm3, %v774_v46  ;;  %871 = vst.msk [vmem:[#allocation2 + $0x110] sm:$0xff] %vm19_vm3, %v806_v47  ;;  %v775_v56 = vadd.f32 %v1660_v54, %v87_v44  ;;  %v807_v57 = vadd.f32 %v1692_v55, %v119_v45  ;;  %v520_v58 = vpop.f32.mrb[3].mxu0  ;;  %v648_v59 = vpop.f32.mrb[3].mxu1  ;;  %v126_v44 = vld [vmem:[#allocation2 + $0x150] sm:$0xff] }
  0xe0   :  { %837 = vst.msk [vmem:[#allocation2] sm:$0xff] %vm19_vm3, %v772_v52  ;;  %869 = vst.msk [vmem:[#allocation2 + $0x100] sm:$0xff] %vm19_vm3, %v804_v53  ;;  %v773_v60 = vadd.f32 %v520_v58, %v85_v50  ;;  %v805_v61 = vadd.f32 %v648_v59, %v117_v51  ;;  %v124_v50 = vld [vmem:[#allocation2 + $0x140] sm:$0xff]  ;;  %v127_v58 = vld [vmem:[#allocation2 + $0x158] sm:$0xff] }
  0xe1   :  { %840 = vst.msk [vmem:[#allocation2 + $0x18] sm:$0xff] %vm19_vm3, %v775_v56  ;;  %872 = vst.msk [vmem:[#allocation2 + $0x118] sm:$0xff] %vm19_vm3, %v807_v57  ;;  %v95_v57 = vld [vmem:[#allocation2 + $0x58] sm:$0xff] }
  0xe2   :  { %838 = vst.msk [vmem:[#allocation2 + $0x8] sm:$0xff] %vm19_vm3, %v773_v60  ;;  %870 = vst.msk [vmem:[#allocation2 + $0x108] sm:$0xff] %vm19_vm3, %v805_v61 }
  0xe4   :  { %v1663_v3 = vpop.f32.mrb[4].mxu0  ;;  %v1695_v4 = vpop.f32.mrb[4].mxu1 }
  0xe5   :  { %v778_v7 = vadd.f32 %v1663_v3, %v90_v62  ;;  %v810_v8 = vadd.f32 %v1695_v4, %v122_v63  ;;  %v533_v9 = vpop.f32.mrb[5].mxu0  ;;  %v661_v10 = vpop.f32.mrb[5].mxu1  ;;  %v125_v3 = vld [vmem:[#allocation2 + $0x148] sm:$0xff] }
  0xe6   :  { %v906_v13 = vld [vmem:[#allocation2 + $0x10] sm:$0xff]  ;;  %v776_v15 = vadd.f32 %v533_v9, %v88_v0  ;;  %v808_v16 = vadd.f32 %v661_v10, %v120_v1  ;;  %v1664_v17 = vpop.f32.mrb[6].mxu0  ;;  %v1696_v18 = vpop.f32.mrb[6].mxu1  ;;  %v93_v1 = vld [vmem:[#allocation2 + $0x48] sm:$0xff] }
  0xe7   :  { %v938_v14 = vld [vmem:[#allocation2 + $0x110] sm:$0xff]  ;;  %v977_v19 = vadd.f32 %v2066_v2, %v906_v13  ;;  %v904_v21 = vld [vmem:[#allocation2] sm:$0xff]  ;;  %843 = vst.msk [vmem:[#allocation2 + $0x30] sm:$0xff] %vm19_vm3, %v778_v7  ;;  %875 = vst.msk [vmem:[#allocation2 + $0x130] sm:$0xff] %vm19_vm3, %v810_v8  ;;  %v779_v23 = vadd.f32 %v1664_v17, %v91_v5  ;;  %v811_v24 = vadd.f32 %v1696_v18, %v123_v6  ;;  %v536_v25 = vpop.f32.mrb[7].mxu0  ;;  %v664_v26 = vpop.f32.mrb[7].mxu1 }
  0xe8   :  { %v1009_v20 = vadd.f32 %v2066_v2, %v938_v14  ;;  %v936_v22 = vld [vmem:[#allocation2 + $0x100] sm:$0xff]  ;;  %v975_v27 = vadd.f32 %v2066_v2, %v904_v21  ;;  %v907_v29 = vld [vmem:[#allocation2 + $0x18] sm:$0xff]  ;;  %841 = vst.msk [vmem:[#allocation2 + $0x20] sm:$0xff] %vm19_vm3, %v776_v15  ;;  %873 = vst.msk [vmem:[#allocation2 + $0x120] sm:$0xff] %vm19_vm3, %v808_v16  ;;  %v777_v31 = vadd.f32 %v536_v25, %v89_v11 }
  0xe9   :  { %v1007_v28 = vadd.f32 %v2066_v2, %v936_v22  ;;  %v939_v30 = vld [vmem:[#allocation2 + $0x118] sm:$0xff]  ;;  %v809_v32 = vadd.f32 %v664_v26, %v121_v12  ;;  %v1041_v33 = vmax.f32 %v977_v19, 0.0  ;;  %v978_v35 = vadd.f32 %v2066_v2, %v907_v29  ;;  %v905_v37 = vld [vmem:[#allocation2 + $0x8] sm:$0xff]  ;;  %844 = vst.msk [vmem:[#allocation2 + $0x38] sm:$0xff] %vm19_vm3, %v779_v23  ;;  %876 = vst.msk [vmem:[#allocation2 + $0x138] sm:$0xff] %vm19_vm3, %v811_v24 }
  0xea   :  { %v1073_v34 = vmax.f32 %v1009_v20, 0.0  ;;  %v1010_v36 = vadd.f32 %v2066_v2, %v939_v30  ;;  %v937_v38 = vld [vmem:[#allocation2 + $0x108] sm:$0xff]  ;;  %v1039_v39 = vmax.f32 %v975_v27, 0.0  ;;  %v976_v41 = vadd.f32 %v2066_v2, %v905_v37  ;;  %842 = vst.msk [vmem:[#allocation2 + $0x28] sm:$0xff] %vm19_vm3, %v777_v31  ;;  %v130_v37 = vld [vmem:[#allocation2 + $0x170] sm:$0xff] }
  0xeb   :  { %v1071_v40 = vmax.f32 %v1007_v28, 0.0  ;;  %v1008_v42 = vadd.f32 %v2066_v2, %v937_v38  ;;  %874 = vst.msk [vmem:[#allocation2 + $0x128] sm:$0xff] %vm19_vm3, %v809_v32  ;;  %v1560_v45 = vpack.c.bf16 %v1041_v33, %v1041_v33  ;;  %v1042_v47 = vmax.f32 %v978_v35, 0.0 }
  0xec   :  { %v1592_v46 = vpack.c.bf16 %v1073_v34, %v1073_v34  ;;  %v1074_v48 = vmax.f32 %v1010_v36, 0.0  ;;  %v1558_v51 = vpack.c.bf16 %v1039_v39, %v1039_v39  ;;  %v1040_v53 = vmax.f32 %v976_v41, 0.0  ;;  %v1667_v55 = vpop.f32.mrb[8].mxu0  ;;  %v1699_v56 = vpop.f32.mrb[8].mxu1  ;;  %v98_v36 = vld [vmem:[#allocation2 + $0x70] sm:$0xff] }
  0xed   :  { %v1590_v52 = vpack.c.bf16 %v1071_v40, %v1071_v40  ;;  %v1072_v54 = vmax.f32 %v1008_v42, 0.0  ;;  %1362 = vst.msk [vmem:[%s2446_s3 + $0x8] sm:$0xf] %vm1359_vm4, %v1560_v45  ;;  %v1561_v59 = vpack.c.bf16 %v1042_v47, %v1042_v47  ;;  %v782_v61 = vadd.f32 %v1667_v55, %v94_v43  ;;  %v549_v63 = vpop.f32.mrb[9].mxu0  ;;  %v677_v0 = vpop.f32.mrb[9].mxu1  ;;  %v96_v42 = vld [vmem:[#allocation2 + $0x60] sm:$0xff] }
  0xee   :  { %1394 = vst.msk [vmem:[%s2446_s3 + $0x88] sm:$0xf] %vm1359_vm4, %v1592_v46  ;;  %v1593_v60 = vpack.c.bf16 %v1074_v48, %v1074_v48  ;;  %v814_v62 = vadd.f32 %v1699_v56, %v126_v44  ;;  %1360 = vst.msk [vmem:[%s2446_s3] sm:$0xf] %vm1359_vm4, %v1558_v51  ;;  %v1559_v4 = vpack.c.bf16 %v1040_v53, %v1040_v53  ;;  %v910_v6 = vld [vmem:[#allocation2 + $0x30] sm:$0xff]  ;;  %v1668_v10 = vpop.f32.mrb[10].mxu0 }
  0xef   :  { %1392 = vst.msk [vmem:[%s2446_s3 + $0x80] sm:$0xf] %vm1359_vm4, %v1590_v52  ;;  %v1591_v5 = vpack.c.bf16 %v1072_v54, %v1072_v54  ;;  %v942_v7 = vld [vmem:[#allocation2 + $0x130] sm:$0xff]  ;;  %v780_v8 = vadd.f32 %v549_v63, %v92_v49  ;;  %v812_v9 = vadd.f32 %v677_v0, %v124_v50  ;;  %v1700_v11 = vpop.f32.mrb[10].mxu1  ;;  %1363 = vst.msk [vmem:[%s2446_s3 + $0xc] sm:$0xf] %vm1359_vm4, %v1561_v59 }
  0xf0   :  { %1395 = vst.msk [vmem:[%s2446_s3 + $0x8c] sm:$0xf] %vm1359_vm4, %v1593_v60  ;;  %v981_v12 = vadd.f32 %v2066_v2, %v910_v6  ;;  %v1013_v13 = vadd.f32 %v2066_v2, %v942_v7  ;;  %v908_v14 = vld [vmem:[#allocation2 + $0x20] sm:$0xff]  ;;  %v783_v16 = vadd.f32 %v1668_v10, %v95_v57  ;;  %v815_v17 = vadd.f32 %v1700_v11, %v127_v58  ;;  %v552_v18 = vpop.f32.mrb[11].mxu0  ;;  %v680_v19 = vpop.f32.mrb[11].mxu1  ;;  %v911_v22 = vld [vmem:[#allocation2 + $0x38] sm:$0xff] }
  0xf1   :  { %v940_v15 = vld [vmem:[#allocation2 + $0x120] sm:$0xff]  ;;  %847 = vst.msk [vmem:[#allocation2 + $0x50] sm:$0xff] %vm19_vm3, %v782_v61  ;;  %879 = vst.msk [vmem:[#allocation2 + $0x150] sm:$0xff] %vm19_vm3, %v814_v62  ;;  %v979_v20 = vadd.f32 %v2066_v2, %v908_v14  ;;  %v943_v23 = vld [vmem:[#allocation2 + $0x138] sm:$0xff]  ;;  %v781_v24 = vadd.f32 %v552_v18, %v93_v1  ;;  %v813_v25 = vadd.f32 %v680_v19, %v125_v3 }
  0xf2   :  { %1361 = vst.msk [vmem:[%s2446_s3 + $0x4] sm:$0xf] %vm1359_vm4, %v1559_v4  ;;  %1393 = vst.msk [vmem:[%s2446_s3 + $0x84] sm:$0xf] %vm1359_vm4, %v1591_v5  ;;  %v1011_v21 = vadd.f32 %v2066_v2, %v940_v15  ;;  %v1045_v26 = vmax.f32 %v981_v12, 0.0  ;;  %v1077_v27 = vmax.f32 %v1013_v13, 0.0  ;;  %v982_v28 = vadd.f32 %v2066_v2, %v911_v22 }
  0xf3   :  { %845 = vst.msk [vmem:[#allocation2 + $0x40] sm:$0xff] %vm19_vm3, %v780_v8  ;;  %877 = vst.msk [vmem:[#allocation2 + $0x140] sm:$0xff] %vm19_vm3, %v812_v9  ;;  %v1014_v29 = vadd.f32 %v2066_v2, %v943_v23  ;;  %v909_v30 = vld [vmem:[#allocation2 + $0x28] sm:$0xff]  ;;  %v1043_v32 = vmax.f32 %v979_v20, 0.0  ;;  %v128_v43 = vld [vmem:[#allocation2 + $0x160] sm:$0xff] }
  0xf4   :  { %v941_v31 = vld [vmem:[#allocation2 + $0x128] sm:$0xff]  ;;  %848 = vst.msk [vmem:[#allocation2 + $0x58] sm:$0xff] %vm19_vm3, %v783_v16  ;;  %880 = vst.msk [vmem:[#allocation2 + $0x158] sm:$0xff] %vm19_vm3, %v815_v17  ;;  %v1075_v33 = vmax.f32 %v1011_v21, 0.0  ;;  %v980_v34 = vadd.f32 %v2066_v2, %v909_v30  ;;  %v1564_v38 = vpack.c.bf16 %v1045_v26, %v1045_v26  ;;  %v1596_v39 = vpack.c.bf16 %v1077_v27, %v1077_v27  ;;  %v1671_v48 = vpop.f32.mrb[12].mxu0  ;;  %v1703_v49 = vpop.f32.mrb[12].mxu1 }
  0xf5   :  { %v1012_v35 = vadd.f32 %v2066_v2, %v941_v31  ;;  %846 = vst.msk [vmem:[#allocation2 + $0x48] sm:$0xff] %vm19_vm3, %v781_v24  ;;  %878 = vst.msk [vmem:[#allocation2 + $0x148] sm:$0xff] %vm19_vm3, %v813_v25  ;;  %v1046_v40 = vmax.f32 %v982_v28, 0.0  ;;  %v1078_v41 = vmax.f32 %v1014_v29, 0.0  ;;  %v1562_v44 = vpack.c.bf16 %v1043_v32, %v1043_v32  ;;  %v99_v50 = vld [vmem:[#allocation2 + $0x78] sm:$0xff]  ;;  %v565_v56 = vpop.f32.mrb[13].mxu0 }
  0xf6   :  { %v1594_v45 = vpack.c.bf16 %v1075_v33, %v1075_v33  ;;  %v1044_v46 = vmax.f32 %v980_v34, 0.0  ;;  %v131_v51 = vld [vmem:[#allocation2 + $0x178] sm:$0xff]  ;;  %1366 = vst.msk [vmem:[%s2446_s3 + $0x18] sm:$0xf] %vm1359_vm4, %v1564_v38  ;;  %1398 = vst.msk [vmem:[%s2446_s3 + $0x98] sm:$0xf] %vm1359_vm4, %v1596_v39  ;;  %v786_v54 = vadd.f32 %v1671_v48, %v98_v36  ;;  %v818_v55 = vadd.f32 %v1703_v49, %v130_v37 }
  0xf7   :  { %v1076_v47 = vmax.f32 %v1012_v35, 0.0  ;;  %v1565_v52 = vpack.c.bf16 %v1046_v40, %v1046_v40  ;;  %v1597_v53 = vpack.c.bf16 %v1078_v41, %v1078_v41  ;;  %v693_v57 = vpop.f32.mrb[13].mxu1  ;;  %v97_v58 = vld [vmem:[#allocation2 + $0x68] sm:$0xff]  ;;  %1364 = vst.msk [vmem:[%s2446_s3 + $0x10] sm:$0xf] %vm1359_vm4, %v1562_v44  ;;  %v784_v0 = vadd.f32 %v565_v56, %v96_v42  ;;  %v1672_v3 = vpop.f32.mrb[14].mxu0 }
  0xf8   :  { %v129_v59 = vld [vmem:[#allocation2 + $0x168] sm:$0xff]  ;;  %1396 = vst.msk [vmem:[%s2446_s3 + $0x90] sm:$0xf] %vm1359_vm4, %v1594_v45  ;;  %v1563_v60 = vpack.c.bf16 %v1044_v46, %v1044_v46  ;;  %v914_v62 = vld [vmem:[#allocation2 + $0x50] sm:$0xff]  ;;  %v816_v1 = vadd.f32 %v693_v57, %v128_v43  ;;  %v1704_v4 = vpop.f32.mrb[14].mxu1  ;;  %v787_v9 = vadd.f32 %v1672_v3, %v99_v50  ;;  %v568_v11 = vpop.f32.mrb[15].mxu0 }
  0xf9   :  { %v1595_v61 = vpack.c.bf16 %v1076_v47, %v1076_v47  ;;  %v946_v63 = vld [vmem:[#allocation2 + $0x150] sm:$0xff]  ;;  %1367 = vst.msk [vmem:[%s2446_s3 + $0x1c] sm:$0xf] %vm1359_vm4, %v1565_v52  ;;  %1399 = vst.msk [vmem:[%s2446_s3 + $0x9c] sm:$0xf] %vm1359_vm4, %v1597_v53  ;;  %v985_v5 = vadd.f32 %v2066_v2, %v914_v62  ;;  %v819_v10 = vadd.f32 %v1704_v4, %v131_v51  ;;  %v696_v12 = vpop.f32.mrb[15].mxu1 }
  0xfa   :  { %v1017_v6 = vadd.f32 %v2066_v2, %v946_v63  ;;  %v912_v7 = vld [vmem:[#allocation2 + $0x40] sm:$0xff]  ;;  %851 = vst.msk [vmem:[#allocation2 + $0x70] sm:$0xff] %vm19_vm3, %v786_v54  ;;  %883 = vst.msk [vmem:[#allocation2 + $0x170] sm:$0xff] %vm19_vm3, %v818_v55  ;;  %v785_v17 = vadd.f32 %v568_v11, %v97_v58  ;;  %v817_v18 = vadd.f32 %v696_v12, %v129_v59  ;;  %v102_v29 = vld [vmem:[#allocation2 + $0x90] sm:$0xff] }
  0xfb   :  { %v944_v8 = vld [vmem:[#allocation2 + $0x140] sm:$0xff]  ;;  %1365 = vst.msk [vmem:[%s2446_s3 + $0x14] sm:$0xf] %vm1359_vm4, %v1563_v60  ;;  %1397 = vst.msk [vmem:[%s2446_s3 + $0x94] sm:$0xf] %vm1359_vm4, %v1595_v61  ;;  %v983_v13 = vadd.f32 %v2066_v2, %v912_v7  ;;  %v915_v15 = vld [vmem:[#allocation2 + $0x58] sm:$0xff] }
  0xfc   :  { %v1015_v14 = vadd.f32 %v2066_v2, %v944_v8  ;;  %v947_v16 = vld [vmem:[#allocation2 + $0x158] sm:$0xff]  ;;  %849 = vst.msk [vmem:[#allocation2 + $0x60] sm:$0xff] %vm19_vm3, %v784_v0  ;;  %881 = vst.msk [vmem:[#allocation2 + $0x160] sm:$0xff] %vm19_vm3, %v816_v1  ;;  %v1049_v19 = vmax.f32 %v985_v5, 0.0  ;;  %v1081_v20 = vmax.f32 %v1017_v6, 0.0  ;;  %v986_v21 = vadd.f32 %v2066_v2, %v915_v15  ;;  %v913_v23 = vld [vmem:[#allocation2 + $0x48] sm:$0xff] }
  0xfd   :  { %v1018_v22 = vadd.f32 %v2066_v2, %v947_v16  ;;  %v945_v24 = vld [vmem:[#allocation2 + $0x148] sm:$0xff]  ;;  %852 = vst.msk [vmem:[#allocation2 + $0x78] sm:$0xff] %vm19_vm3, %v787_v9  ;;  %884 = vst.msk [vmem:[#allocation2 + $0x178] sm:$0xff] %vm19_vm3, %v819_v10  ;;  %v1047_v25 = vmax.f32 %v983_v13, 0.0  ;;  %v984_v27 = vadd.f32 %v2066_v2, %v913_v23  ;;  %v134_v30 = vld [vmem:[#allocation2 + $0x190] sm:$0xff]  ;;  %v1675_v41 = vpop.f32.mrb[16].mxu0 }
  0xfe   :  { %v1079_v26 = vmax.f32 %v1015_v14, 0.0  ;;  %v1016_v28 = vadd.f32 %v2066_v2, %v945_v24  ;;  %850 = vst.msk [vmem:[#allocation2 + $0x68] sm:$0xff] %vm19_vm3, %v785_v17  ;;  %882 = vst.msk [vmem:[#allocation2 + $0x168] sm:$0xff] %vm19_vm3, %v817_v18  ;;  %v1568_v31 = vpack.c.bf16 %v1049_v19, %v1049_v19  ;;  %v1600_v32 = vpack.c.bf16 %v1081_v20, %v1081_v20  ;;  %v100_v35 = vld [vmem:[#allocation2 + $0x80] sm:$0xff]  ;;  %v1707_v42 = vpop.f32.mrb[16].mxu1  ;;  %v103_v43 = vld [vmem:[#allocation2 + $0x98] sm:$0xff] }
  0xff   :  { %v1050_v33 = vmax.f32 %v986_v21, 0.0  ;;  %v1082_v34 = vmax.f32 %v1018_v22, 0.0  ;;  %v132_v36 = vld [vmem:[#allocation2 + $0x180] sm:$0xff]  ;;  %v1566_v37 = vpack.c.bf16 %v1047_v25, %v1047_v25  ;;  %v1048_v39 = vmax.f32 %v984_v27, 0.0  ;;  %v135_v44 = vld [vmem:[#allocation2 + $0x198] sm:$0xff]  ;;  %v581_v49 = vpop.f32.mrb[17].mxu0 }
 0x100   :  { %v1598_v38 = vpack.c.bf16 %v1079_v26, %v1079_v26  ;;  %v1080_v40 = vmax.f32 %v1016_v28, 0.0  ;;  %1370 = vst.msk [vmem:[%s2446_s3 + $0x28] sm:$0xf] %vm1359_vm4, %v1568_v31  ;;  %1402 = vst.msk [vmem:[%s2446_s3 + $0xa8] sm:$0xf] %vm1359_vm4, %v1600_v32  ;;  %v790_v47 = vadd.f32 %v1675_v41, %v102_v29  ;;  %v822_v48 = vadd.f32 %v1707_v42, %v134_v30  ;;  %v709_v50 = vpop.f32.mrb[17].mxu1 }
 0x101   :  { %v1569_v45 = vpack.c.bf16 %v1050_v33, %v1050_v33  ;;  %v1601_v46 = vpack.c.bf16 %v1082_v34, %v1082_v34  ;;  %v101_v51 = vld [vmem:[#allocation2 + $0x88] sm:$0xff]  ;;  %1368 = vst.msk [vmem:[%s2446_s3 + $0x20] sm:$0xf] %vm1359_vm4, %v1566_v37  ;;  %v1567_v53 = vpack.c.bf16 %v1048_v39, %v1048_v39  ;;  %v918_v55 = vld [vmem:[#allocation2 + $0x70] sm:$0xff]  ;;  %v788_v57 = vadd.f32 %v581_v49, %v100_v35  ;;  %v1676_v59 = vpop.f32.mrb[18].mxu0  ;;  %v1708_v60 = vpop.f32.mrb[18].mxu1 }
 0x102   :  { %v133_v52 = vld [vmem:[#allocation2 + $0x188] sm:$0xff]  ;;  %1400 = vst.msk [vmem:[%s2446_s3 + $0xa0] sm:$0xf] %vm1359_vm4, %v1598_v38  ;;  %v1599_v54 = vpack.c.bf16 %v1080_v40, %v1080_v40  ;;  %v950_v56 = vld [vmem:[#allocation2 + $0x170] sm:$0xff]  ;;  %v820_v58 = vadd.f32 %v709_v50, %v132_v36  ;;  %v989_v61 = vadd.f32 %v2066_v2, %v918_v55  ;;  %v791_v1 = vadd.f32 %v1676_v59, %v103_v43  ;;  %v584_v4 = vpop.f32.mrb[19].mxu0  ;;  %v712_v5 = vpop.f32.mrb[19].mxu1 }
 0x103   :  { %1371 = vst.msk [vmem:[%s2446_s3 + $0x2c] sm:$0xf] %vm1359_vm4, %v1569_v45  ;;  %1403 = vst.msk [vmem:[%s2446_s3 + $0xac] sm:$0xf] %vm1359_vm4, %v1601_v46  ;;  %v1021_v62 = vadd.f32 %v2066_v2, %v950_v56  ;;  %v916_v63 = vld [vmem:[#allocation2 + $0x60] sm:$0xff]  ;;  %v823_v3 = vadd.f32 %v1708_v60, %v135_v44  ;;  %v789_v10 = vadd.f32 %v584_v4, %v101_v51  ;;  %v106_v22 = vld [vmem:[#allocation2 + $0xb0] sm:$0xff] }
 0x104   :  { %v948_v0 = vld [vmem:[#allocation2 + $0x160] sm:$0xff]  ;;  %855 = vst.msk [vmem:[#allocation2 + $0x90] sm:$0xff] %vm19_vm3, %v790_v47  ;;  %887 = vst.msk [vmem:[#allocation2 + $0x190] sm:$0xff] %vm19_vm3, %v822_v48  ;;  %v987_v6 = vadd.f32 %v2066_v2, %v916_v63  ;;  %v919_v8 = vld [vmem:[#allocation2 + $0x78] sm:$0xff]  ;;  %v821_v11 = vadd.f32 %v712_v5, %v133_v52  ;;  %v1053_v12 = vmax.f32 %v989_v61, 0.0  ;;  %v1679_v34 = vpop.f32.mrb[20].mxu0 }
 0x105   :  { %1369 = vst.msk [vmem:[%s2446_s3 + $0x24] sm:$0xf] %vm1359_vm4, %v1567_v53  ;;  %1401 = vst.msk [vmem:[%s2446_s3 + $0xa4] sm:$0xf] %vm1359_vm4, %v1599_v54  ;;  %v1019_v7 = vadd.f32 %v2066_v2, %v948_v0  ;;  %v951_v9 = vld [vmem:[#allocation2 + $0x178] sm:$0xff]  ;;  %v1085_v13 = vmax.f32 %v1021_v62, 0.0  ;;  %v990_v14 = vadd.f32 %v2066_v2, %v919_v8  ;;  %v794_v40 = vadd.f32 %v1679_v34, %v106_v22 }
 0x106   :  { %853 = vst.msk [vmem:[#allocation2 + $0x80] sm:$0xff] %vm19_vm3, %v788_v57  ;;  %885 = vst.msk [vmem:[#allocation2 + $0x180] sm:$0xff] %vm19_vm3, %v820_v58  ;;  %v1022_v15 = vadd.f32 %v2066_v2, %v951_v9  ;;  %v917_v16 = vld [vmem:[#allocation2 + $0x68] sm:$0xff]  ;;  %v1051_v18 = vmax.f32 %v987_v6, 0.0  ;;  %v138_v23 = vld [vmem:[#allocation2 + $0x1b0] sm:$0xff]  ;;  %v1572_v24 = vpack.c.bf16 %v1053_v12, %v1053_v12  ;;  %v1711_v35 = vpop.f32.mrb[20].mxu1 }
 0x107   :  { %v949_v17 = vld [vmem:[#allocation2 + $0x168] sm:$0xff]  ;;  %856 = vst.msk [vmem:[#allocation2 + $0x98] sm:$0xff] %vm19_vm3, %v791_v1  ;;  %888 = vst.msk [vmem:[#allocation2 + $0x198] sm:$0xff] %vm19_vm3, %v823_v3  ;;  %v1083_v19 = vmax.f32 %v1019_v7, 0.0  ;;  %v988_v20 = vadd.f32 %v2066_v2, %v917_v16  ;;  %v1604_v25 = vpack.c.bf16 %v1085_v13, %v1085_v13  ;;  %v1054_v26 = vmax.f32 %v990_v14, 0.0  ;;  %v104_v28 = vld [vmem:[#allocation2 + $0xa0] sm:$0xff] }
 0x108   :  { %v1020_v21 = vadd.f32 %v2066_v2, %v949_v17  ;;  %854 = vst.msk [vmem:[#allocation2 + $0x88] sm:$0xff] %vm19_vm3, %v789_v10  ;;  %886 = vst.msk [vmem:[#allocation2 + $0x188] sm:$0xff] %vm19_vm3, %v821_v11  ;;  %v1086_v27 = vmax.f32 %v1022_v15, 0.0  ;;  %v136_v29 = vld [vmem:[#allocation2 + $0x1a0] sm:$0xff]  ;;  %v1570_v30 = vpack.c.bf16 %v1051_v18, %v1051_v18  ;;  %v107_v36 = vld [vmem:[#allocation2 + $0xb8] sm:$0xff]  ;;  %v826_v41 = vadd.f32 %v1711_v35, %v138_v23  ;;  %v597_v42 = vpop.f32.mrb[21].mxu0 }
 0x109   :  { %v1602_v31 = vpack.c.bf16 %v1083_v19, %v1083_v19  ;;  %v1052_v32 = vmax.f32 %v988_v20, 0.0  ;;  %v139_v37 = vld [vmem:[#allocation2 + $0x1b8] sm:$0xff]  ;;  %1374 = vst.msk [vmem:[%s2446_s3 + $0x38] sm:$0xf] %vm1359_vm4, %v1572_v24  ;;  %1406 = vst.msk [vmem:[%s2446_s3 + $0xb8] sm:$0xf] %vm1359_vm4, %v1604_v25  ;;  %v1573_v38 = vpack.c.bf16 %v1054_v26, %v1054_v26  ;;  %v792_v50 = vadd.f32 %v597_v42, %v104_v28 }
 0x10a   :  { %v1084_v33 = vmax.f32 %v1020_v21, 0.0  ;;  %v1605_v39 = vpack.c.bf16 %v1086_v27, %v1086_v27  ;;  %v725_v43 = vpop.f32.mrb[21].mxu1  ;;  %v105_v44 = vld [vmem:[#allocation2 + $0xa8] sm:$0xff]  ;;  %1372 = vst.msk [vmem:[%s2446_s3 + $0x30] sm:$0xf] %vm1359_vm4, %v1570_v30  ;;  %v1680_v52 = vpop.f32.mrb[22].mxu0 }
 0x10b   :  { %v137_v45 = vld [vmem:[#allocation2 + $0x1a8] sm:$0xff]  ;;  %1404 = vst.msk [vmem:[%s2446_s3 + $0xb0] sm:$0xf] %vm1359_vm4, %v1602_v31  ;;  %v1571_v46 = vpack.c.bf16 %v1052_v32, %v1052_v32  ;;  %v922_v48 = vld [vmem:[#allocation2 + $0x90] sm:$0xff]  ;;  %v824_v51 = vadd.f32 %v725_v43, %v136_v29  ;;  %v1712_v53 = vpop.f32.mrb[22].mxu1  ;;  %v795_v58 = vadd.f32 %v1680_v52, %v107_v36  ;;  %v600_v60 = vpop.f32.mrb[23].mxu0 }
 0x10c   :  { %v1603_v47 = vpack.c.bf16 %v1084_v33, %v1084_v33  ;;  %v954_v49 = vld [vmem:[#allocation2 + $0x190] sm:$0xff]  ;;  %1375 = vst.msk [vmem:[%s2446_s3 + $0x3c] sm:$0xf] %vm1359_vm4, %v1573_v38  ;;  %1407 = vst.msk [vmem:[%s2446_s3 + $0xbc] sm:$0xf] %vm1359_vm4, %v1605_v39  ;;  %v993_v54 = vadd.f32 %v2066_v2, %v922_v48  ;;  %v827_v59 = vadd.f32 %v1712_v53, %v139_v37  ;;  %v728_v61 = vpop.f32.mrb[23].mxu1 }
 0x10d   :  { %v1025_v55 = vadd.f32 %v2066_v2, %v954_v49  ;;  %v920_v56 = vld [vmem:[#allocation2 + $0x80] sm:$0xff]  ;;  %859 = vst.msk [vmem:[#allocation2 + $0xb0] sm:$0xff] %vm19_vm3, %v794_v40  ;;  %891 = vst.msk [vmem:[#allocation2 + $0x1b0] sm:$0xff] %vm19_vm3, %v826_v41  ;;  %v793_v3 = vadd.f32 %v600_v60, %v105_v44  ;;  %v825_v4 = vadd.f32 %v728_v61, %v137_v45  ;;  %v110_v15 = vld [vmem:[#allocation2 + $0xd0] sm:$0xff]  ;;  %v1683_v27 = vpop.f32.mrb[24].mxu0  ;;  %v1715_v28 = vpop.f32.mrb[24].mxu1 }
 0x10e   :  { %v952_v57 = vld [vmem:[#allocation2 + $0x180] sm:$0xff]  ;;  %1373 = vst.msk [vmem:[%s2446_s3 + $0x34] sm:$0xf] %vm1359_vm4, %v1571_v46  ;;  %1405 = vst.msk [vmem:[%s2446_s3 + $0xb4] sm:$0xf] %vm1359_vm4, %v1603_v47  ;;  %v991_v62 = vadd.f32 %v2066_v2, %v920_v56  ;;  %v923_v0 = vld [vmem:[#allocation2 + $0x98] sm:$0xff]  ;;  %v798_v33 = vadd.f32 %v1683_v27, %v110_v15 }
 0x10f   :  { %v1023_v63 = vadd.f32 %v2066_v2, %v952_v57  ;;  %v955_v1 = vld [vmem:[#allocation2 + $0x198] sm:$0xff]  ;;  %857 = vst.msk [vmem:[#allocation2 + $0xa0] sm:$0xff] %vm19_vm3, %v792_v50  ;;  %889 = vst.msk [vmem:[#allocation2 + $0x1a0] sm:$0xff] %vm19_vm3, %v824_v51  ;;  %v1057_v5 = vmax.f32 %v993_v54, 0.0  ;;  %v1089_v6 = vmax.f32 %v1025_v55, 0.0  ;;  %v994_v7 = vadd.f32 %v2066_v2, %v923_v0  ;;  %v921_v9 = vld [vmem:[#allocation2 + $0x88] sm:$0xff] }
 0x110   :  { %v1026_v8 = vadd.f32 %v2066_v2, %v955_v1  ;;  %v953_v10 = vld [vmem:[#allocation2 + $0x188] sm:$0xff]  ;;  %860 = vst.msk [vmem:[#allocation2 + $0xb8] sm:$0xff] %vm19_vm3, %v795_v58  ;;  %892 = vst.msk [vmem:[#allocation2 + $0x1b8] sm:$0xff] %vm19_vm3, %v827_v59  ;;  %v1055_v11 = vmax.f32 %v991_v62, 0.0  ;;  %v992_v13 = vadd.f32 %v2066_v2, %v921_v9  ;;  %v142_v16 = vld [vmem:[#allocation2 + $0x1d0] sm:$0xff]  ;;  %v613_v35 = vpop.f32.mrb[25].mxu0 }
 0x111   :  { %v1087_v12 = vmax.f32 %v1023_v63, 0.0  ;;  %v1024_v14 = vadd.f32 %v2066_v2, %v953_v10  ;;  %858 = vst.msk [vmem:[#allocation2 + $0xa8] sm:$0xff] %vm19_vm3, %v793_v3  ;;  %890 = vst.msk [vmem:[#allocation2 + $0x1a8] sm:$0xff] %vm19_vm3, %v825_v4  ;;  %v1576_v17 = vpack.c.bf16 %v1057_v5, %v1057_v5  ;;  %v1608_v18 = vpack.c.bf16 %v1089_v6, %v1089_v6  ;;  %v108_v21 = vld [vmem:[#allocation2 + $0xc0] sm:$0xff]  ;;  %v111_v29 = vld [vmem:[#allocation2 + $0xd8] sm:$0xff]  ;;  %v741_v36 = vpop.f32.mrb[25].mxu1 }
 0x112   :  { %v1058_v19 = vmax.f32 %v994_v7, 0.0  ;;  %v1090_v20 = vmax.f32 %v1026_v8, 0.0  ;;  %v140_v22 = vld [vmem:[#allocation2 + $0x1c0] sm:$0xff]  ;;  %v1574_v23 = vpack.c.bf16 %v1055_v11, %v1055_v11  ;;  %v1056_v25 = vmax.f32 %v992_v13, 0.0  ;;  %v143_v30 = vld [vmem:[#allocation2 + $0x1d8] sm:$0xff]  ;;  %v109_v37 = vld [vmem:[#allocation2 + $0xc8] sm:$0xff] }
 0x113   :  { %v1606_v24 = vpack.c.bf16 %v1087_v12, %v1087_v12  ;;  %v1088_v26 = vmax.f32 %v1024_v14, 0.0  ;;  %1378 = vst.msk [vmem:[%s2446_s3 + $0x48] sm:$0xf] %vm1359_vm4, %v1576_v17  ;;  %1410 = vst.msk [vmem:[%s2446_s3 + $0xc8] sm:$0xf] %vm1359_vm4, %v1608_v18  ;;  %v830_v34 = vadd.f32 %v1715_v28, %v142_v16  ;;  %v141_v38 = vld [vmem:[#allocation2 + $0x1c8] sm:$0xff]  ;;  %v796_v43 = vadd.f32 %v613_v35, %v108_v21 }
 0x114   :  { %v1577_v31 = vpack.c.bf16 %v1058_v19, %v1058_v19  ;;  %v1609_v32 = vpack.c.bf16 %v1090_v20, %v1090_v20  ;;  %1376 = vst.msk [vmem:[%s2446_s3 + $0x40] sm:$0xf] %vm1359_vm4, %v1574_v23  ;;  %v1575_v39 = vpack.c.bf16 %v1056_v25, %v1056_v25  ;;  %v926_v41 = vld [vmem:[#allocation2 + $0xb0] sm:$0xff]  ;;  %v828_v44 = vadd.f32 %v741_v36, %v140_v22  ;;  %v1684_v45 = vpop.f32.mrb[26].mxu0  ;;  %v1716_v46 = vpop.f32.mrb[26].mxu1  ;;  %v112_v14 = vld [vmem:[#allocation2 + $0xe0] sm:$0xff] }
 0x115   :  { %1408 = vst.msk [vmem:[%s2446_s3 + $0xc0] sm:$0xf] %vm1359_vm4, %v1606_v24  ;;  %v1607_v40 = vpack.c.bf16 %v1088_v26, %v1088_v26  ;;  %v958_v42 = vld [vmem:[#allocation2 + $0x1b0] sm:$0xff]  ;;  %v997_v47 = vadd.f32 %v2066_v2, %v926_v41  ;;  %v799_v51 = vadd.f32 %v1684_v45, %v111_v29  ;;  %v831_v52 = vadd.f32 %v1716_v46, %v143_v30  ;;  %v616_v53 = vpop.f32.mrb[27].mxu0  ;;  %v744_v54 = vpop.f32.mrb[27].mxu1  ;;  %v144_v15 = vld [vmem:[#allocation2 + $0x1e0] sm:$0xff] }
 0x116   :  { %1379 = vst.msk [vmem:[%s2446_s3 + $0x4c] sm:$0xf] %vm1359_vm4, %v1577_v31  ;;  %1411 = vst.msk [vmem:[%s2446_s3 + $0xcc] sm:$0xf] %vm1359_vm4, %v1609_v32  ;;  %v1029_v48 = vadd.f32 %v2066_v2, %v958_v42  ;;  %v924_v49 = vld [vmem:[#allocation2 + $0xa0] sm:$0xff]  ;;  %v797_v59 = vadd.f32 %v616_v53, %v109_v37  ;;  %v829_v60 = vadd.f32 %v744_v54, %v141_v38  ;;  %v114_v8 = vld [vmem:[#allocation2 + $0xf0] sm:$0xff] }
 0x117   :  { %v956_v50 = vld [vmem:[#allocation2 + $0x1a0] sm:$0xff]  ;;  %863 = vst.msk [vmem:[#allocation2 + $0xd0] sm:$0xff] %vm19_vm3, %v798_v33  ;;  %895 = vst.msk [vmem:[#allocation2 + $0x1d0] sm:$0xff] %vm19_vm3, %v830_v34  ;;  %v995_v55 = vadd.f32 %v2066_v2, %v924_v49  ;;  %v927_v57 = vld [vmem:[#allocation2 + $0xb8] sm:$0xff]  ;;  %v1061_v61 = vmax.f32 %v997_v47, 0.0  ;;  %v1687_v20 = vpop.f32.mrb[28].mxu0 }
 0x118   :  { %1377 = vst.msk [vmem:[%s2446_s3 + $0x44] sm:$0xf] %vm1359_vm4, %v1575_v39  ;;  %1409 = vst.msk [vmem:[%s2446_s3 + $0xc4] sm:$0xf] %vm1359_vm4, %v1607_v40  ;;  %v1027_v56 = vadd.f32 %v2066_v2, %v956_v50  ;;  %v959_v58 = vld [vmem:[#allocation2 + $0x1b8] sm:$0xff]  ;;  %v1093_v62 = vmax.f32 %v1029_v48, 0.0  ;;  %v998_v63 = vadd.f32 %v2066_v2, %v927_v57  ;;  %v802_v26 = vadd.f32 %v1687_v20, %v114_v8 }
 0x119   :  { %861 = vst.msk [vmem:[#allocation2 + $0xc0] sm:$0xff] %vm19_vm3, %v796_v43  ;;  %893 = vst.msk [vmem:[#allocation2 + $0x1c0] sm:$0xff] %vm19_vm3, %v828_v44  ;;  %v1030_v0 = vadd.f32 %v2066_v2, %v959_v58  ;;  %v925_v1 = vld [vmem:[#allocation2 + $0xa8] sm:$0xff]  ;;  %v1059_v4 = vmax.f32 %v995_v55, 0.0  ;;  %v146_v9 = vld [vmem:[#allocation2 + $0x1f0] sm:$0xff]  ;;  %v1580_v10 = vpack.c.bf16 %v1061_v61, %v1061_v61  ;;  %v1719_v21 = vpop.f32.mrb[28].mxu1 }
 0x11a   :  { %v957_v3 = vld [vmem:[#allocation2 + $0x1a8] sm:$0xff]  ;;  %864 = vst.msk [vmem:[#allocation2 + $0xd8] sm:$0xff] %vm19_vm3, %v799_v51  ;;  %896 = vst.msk [vmem:[#allocation2 + $0x1d8] sm:$0xff] %vm19_vm3, %v831_v52  ;;  %v1091_v5 = vmax.f32 %v1027_v56, 0.0  ;;  %v996_v6 = vadd.f32 %v2066_v2, %v925_v1  ;;  %v1612_v11 = vpack.c.bf16 %v1093_v62, %v1093_v62  ;;  %v1062_v12 = vmax.f32 %v998_v63, 0.0  ;;  %v115_v22 = vld [vmem:[#allocation2 + $0xf8] sm:$0xff] }
 0x11b   :  { %v1028_v7 = vadd.f32 %v2066_v2, %v957_v3  ;;  %862 = vst.msk [vmem:[#allocation2 + $0xc8] sm:$0xff] %vm19_vm3, %v797_v59  ;;  %894 = vst.msk [vmem:[#allocation2 + $0x1c8] sm:$0xff] %vm19_vm3, %v829_v60  ;;  %v1094_v13 = vmax.f32 %v1030_v0, 0.0  ;;  %v1578_v16 = vpack.c.bf16 %v1059_v4, %v1059_v4  ;;  %v147_v23 = vld [vmem:[#allocation2 + $0x1f8] sm:$0xff]  ;;  %v834_v27 = vadd.f32 %v1719_v21, %v146_v9  ;;  %v629_v28 = vpop.f32.mrb[29].mxu0  ;;  %v757_v29 = vpop.f32.mrb[29].mxu1 }
 0x11c   :  { %v1610_v17 = vpack.c.bf16 %v1091_v5, %v1091_v5  ;;  %v1060_v18 = vmax.f32 %v996_v6, 0.0  ;;  %1382 = vst.msk [vmem:[%s2446_s3 + $0x58] sm:$0xf] %vm1359_vm4, %v1580_v10  ;;  %1414 = vst.msk [vmem:[%s2446_s3 + $0xd8] sm:$0xf] %vm1359_vm4, %v1612_v11  ;;  %v1581_v24 = vpack.c.bf16 %v1062_v12, %v1062_v12  ;;  %v113_v30 = vld [vmem:[#allocation2 + $0xe8] sm:$0xff]  ;;  %v800_v36 = vadd.f32 %v629_v28, %v112_v14 }
 0x11d   :  { %v1092_v19 = vmax.f32 %v1028_v7, 0.0  ;;  %v1613_v25 = vpack.c.bf16 %v1094_v13, %v1094_v13  ;;  %v145_v31 = vld [vmem:[#allocation2 + $0x1e8] sm:$0xff]  ;;  %1380 = vst.msk [vmem:[%s2446_s3 + $0x50] sm:$0xf] %vm1359_vm4, %v1578_v16  ;;  %v832_v37 = vadd.f32 %v757_v29, %v144_v15  ;;  %v1688_v38 = vpop.f32.mrb[30].mxu0  ;;  %v1720_v39 = vpop.f32.mrb[30].mxu1 }
 0x11e   :  { %1412 = vst.msk [vmem:[%s2446_s3 + $0xd0] sm:$0xf] %vm1359_vm4, %v1610_v17  ;;  %v1579_v32 = vpack.c.bf16 %v1060_v18, %v1060_v18  ;;  %v930_v34 = vld [vmem:[#allocation2 + $0xd0] sm:$0xff]  ;;  %1383 = vst.msk [vmem:[%s2446_s3 + $0x5c] sm:$0xf] %vm1359_vm4, %v1581_v24  ;;  %v803_v44 = vadd.f32 %v1688_v38, %v115_v22  ;;  %v835_v45 = vadd.f32 %v1720_v39, %v147_v23  ;;  %v632_v46 = vpop.f32.mrb[31].mxu0 }
 0x11f   :  { %v1611_v33 = vpack.c.bf16 %v1092_v19, %v1092_v19  ;;  %v962_v35 = vld [vmem:[#allocation2 + $0x1d0] sm:$0xff]  ;;  %1415 = vst.msk [vmem:[%s2446_s3 + $0xdc] sm:$0xf] %vm1359_vm4, %v1613_v25  ;;  %v1001_v40 = vadd.f32 %v2066_v2, %v930_v34  ;;  %v760_v47 = vpop.f32.mrb[31].mxu1  ;;  %v801_v52 = vadd.f32 %v632_v46, %v113_v30  ;;  %v1758_v25 = vld [vmem:[%s2445_s2] ss:$0 sm:$0xff] }
 0x120   :  { %v1033_v41 = vadd.f32 %v2066_v2, %v962_v35  ;;  %v928_v42 = vld [vmem:[#allocation2 + $0xc0] sm:$0xff]  ;;  %867 = vst.msk [vmem:[#allocation2 + $0xf0] sm:$0xff] %vm19_vm3, %v802_v26  ;;  %899 = vst.msk [vmem:[#allocation2 + $0x1f0] sm:$0xff] %vm19_vm3, %v834_v27  ;;  %v833_v53 = vadd.f32 %v760_v47, %v145_v31 }
 0x121   :  { %v960_v43 = vld [vmem:[#allocation2 + $0x1c0] sm:$0xff]  ;;  %1381 = vst.msk [vmem:[%s2446_s3 + $0x54] sm:$0xf] %vm1359_vm4, %v1579_v32  ;;  %1413 = vst.msk [vmem:[%s2446_s3 + $0xd4] sm:$0xf] %vm1359_vm4, %v1611_v33  ;;  %v999_v48 = vadd.f32 %v2066_v2, %v928_v42  ;;  %v931_v50 = vld [vmem:[#allocation2 + $0xd8] sm:$0xff] }
 0x122   :  { %v1031_v49 = vadd.f32 %v2066_v2, %v960_v43  ;;  %v963_v51 = vld [vmem:[#allocation2 + $0x1d8] sm:$0xff]  ;;  %865 = vst.msk [vmem:[#allocation2 + $0xe0] sm:$0xff] %vm19_vm3, %v800_v36  ;;  %897 = vst.msk [vmem:[#allocation2 + $0x1e0] sm:$0xff] %vm19_vm3, %v832_v37  ;;  %v1065_v54 = vmax.f32 %v1001_v40, 0.0  ;;  %v1097_v55 = vmax.f32 %v1033_v41, 0.0  ;;  %v1002_v56 = vadd.f32 %v2066_v2, %v931_v50  ;;  %v929_v58 = vld [vmem:[#allocation2 + $0xc8] sm:$0xff] }
 0x123   :  { %v1034_v57 = vadd.f32 %v2066_v2, %v963_v51  ;;  %v961_v59 = vld [vmem:[#allocation2 + $0x1c8] sm:$0xff]  ;;  %868 = vst.msk [vmem:[#allocation2 + $0xf8] sm:$0xff] %vm19_vm3, %v803_v44  ;;  %900 = vst.msk [vmem:[#allocation2 + $0x1f8] sm:$0xff] %vm19_vm3, %v835_v45  ;;  %v1063_v60 = vmax.f32 %v999_v48, 0.0  ;;  %v1000_v62 = vadd.f32 %v2066_v2, %v929_v58 }
 0x124   :  { %v1095_v61 = vmax.f32 %v1031_v49, 0.0  ;;  %v1032_v63 = vadd.f32 %v2066_v2, %v961_v59  ;;  %866 = vst.msk [vmem:[#allocation2 + $0xe8] sm:$0xff] %vm19_vm3, %v801_v52  ;;  %898 = vst.msk [vmem:[#allocation2 + $0x1e8] sm:$0xff] %vm19_vm3, %v833_v53  ;;  %v1584_v0 = vpack.c.bf16 %v1065_v54, %v1065_v54  ;;  %v1616_v1 = vpack.c.bf16 %v1097_v55, %v1097_v55 }
 0x125   :  { %v1066_v3 = vmax.f32 %v1002_v56, 0.0  ;;  %v1098_v4 = vmax.f32 %v1034_v57, 0.0  ;;  %v1582_v5 = vpack.c.bf16 %v1063_v60, %v1063_v60  ;;  %v1064_v7 = vmax.f32 %v1000_v62, 0.0 }
 0x126   :  { %v1614_v6 = vpack.c.bf16 %v1095_v61, %v1095_v61  ;;  %v1096_v8 = vmax.f32 %v1032_v63, 0.0  ;;  %1386 = vst.msk [vmem:[%s2446_s3 + $0x68] sm:$0xf] %vm1359_vm4, %v1584_v0  ;;  %1418 = vst.msk [vmem:[%s2446_s3 + $0xe8] sm:$0xf] %vm1359_vm4, %v1616_v1 }
 0x127   :  { %v1585_v9 = vpack.c.bf16 %v1066_v3, %v1066_v3  ;;  %v1617_v10 = vpack.c.bf16 %v1098_v4, %v1098_v4  ;;  %1384 = vst.msk [vmem:[%s2446_s3 + $0x60] sm:$0xf] %vm1359_vm4, %v1582_v5  ;;  %v1583_v11 = vpack.c.bf16 %v1064_v7, %v1064_v7  ;;  %v934_v13 = vld [vmem:[#allocation2 + $0xf0] sm:$0xff] }
 0x128   :  { %1416 = vst.msk [vmem:[%s2446_s3 + $0xe0] sm:$0xf] %vm1359_vm4, %v1614_v6  ;;  %v1615_v12 = vpack.c.bf16 %v1096_v8, %v1096_v8  ;;  %v966_v14 = vld [vmem:[#allocation2 + $0x1f0] sm:$0xff]  ;;  %v1005_v15 = vadd.f32 %v2066_v2, %v934_v13 }
 0x129   :  { %1387 = vst.msk [vmem:[%s2446_s3 + $0x6c] sm:$0xf] %vm1359_vm4, %v1585_v9  ;;  %1419 = vst.msk [vmem:[%s2446_s3 + $0xec] sm:$0xf] %vm1359_vm4, %v1617_v10  ;;  %v1037_v16 = vadd.f32 %v2066_v2, %v966_v14  ;;  %v932_v17 = vld [vmem:[#allocation2 + $0xe0] sm:$0xff] }
 0x12a   :  { %v964_v18 = vld [vmem:[#allocation2 + $0x1e0] sm:$0xff]  ;;  %1385 = vst.msk [vmem:[%s2446_s3 + $0x64] sm:$0xf] %vm1359_vm4, %v1583_v11  ;;  %1417 = vst.msk [vmem:[%s2446_s3 + $0xe4] sm:$0xf] %vm1359_vm4, %v1615_v12  ;;  %v1003_v19 = vadd.f32 %v2066_v2, %v932_v17  ;;  %v935_v21 = vld [vmem:[#allocation2 + $0xf8] sm:$0xff] }
 0x12b   :  { %v1035_v20 = vadd.f32 %v2066_v2, %v964_v18  ;;  %v967_v22 = vld [vmem:[#allocation2 + $0x1f8] sm:$0xff]  ;;  %v1069_v23 = vmax.f32 %v1005_v15, 0.0  ;;  %v1101_v24 = vmax.f32 %v1037_v16, 0.0  ;;  %v1006_v26 = vadd.f32 %v1758_v25, %v935_v21  ;;  %v933_v28 = vld [vmem:[#allocation2 + $0xe8] sm:$0xff] }
 0x12c   :  { %v1038_v27 = vadd.f32 %v1758_v25, %v967_v22  ;;  %v965_v29 = vld [vmem:[#allocation2 + $0x1e8] sm:$0xff]  ;;  %v1067_v30 = vmax.f32 %v1003_v19, 0.0  ;;  %v1004_v32 = vadd.f32 %v1758_v25, %v933_v28 }
 0x12d   :  { %v1099_v31 = vmax.f32 %v1035_v20, 0.0  ;;  %v1036_v33 = vadd.f32 %v1758_v25, %v965_v29  ;;  %v1588_v34 = vpack.c.bf16 %v1069_v23, %v1069_v23  ;;  %v1620_v35 = vpack.c.bf16 %v1101_v24, %v1101_v24 }
 0x12e   :  { %v1070_v36 = vmax.f32 %v1006_v26, 0.0  ;;  %v1102_v2 = vmax.f32 %v1038_v27, 0.0  ;;  %v1586_v37 = vpack.c.bf16 %v1067_v30, %v1067_v30  ;;  %v1068_v39 = vmax.f32 %v1004_v32, 0.0 }
 0x12f   :  { %v1618_v38 = vpack.c.bf16 %v1099_v31, %v1099_v31  ;;  %v1100_v40 = vmax.f32 %v1036_v33, 0.0  ;;  %1390 = vst.msk [vmem:[%s2446_s3 + $0x78] sm:$0xf] %vm1359_vm4, %v1588_v34  ;;  %1422 = vst.msk [vmem:[%s2446_s3 + $0xf8] sm:$0xf] %vm1359_vm4, %v1620_v35 }
 0x130   :  { %v1589_v41 = vpack.c.bf16 %v1070_v36, %v1070_v36  ;;  %v1621_v42 = vpack.c.bf16 %v1102_v2, %v1102_v2  ;;  %1388 = vst.msk [vmem:[%s2446_s3 + $0x70] sm:$0xf] %vm1359_vm4, %v1586_v37  ;;  %v1587_v43 = vpack.c.bf16 %v1068_v39, %v1068_v39 }
 0x131   :  { %1420 = vst.msk [vmem:[%s2446_s3 + $0xf0] sm:$0xf] %vm1359_vm4, %v1618_v38  ;;  %v1619_v44 = vpack.c.bf16 %v1100_v40, %v1100_v40 }
 0x132   :  { %1391 = vst.msk [vmem:[%s2446_s3 + $0x7c] sm:$0xf] %vm1359_vm4, %v1589_v41  ;;  %1423 = vst.msk [vmem:[%s2446_s3 + $0xfc] sm:$0xf] %vm1359_vm4, %v1621_v42 }
 0x133   :  { %1389 = vst.msk [vmem:[%s2446_s3 + $0x74] sm:$0xf] %vm1359_vm4, %v1587_v43  ;;  %1421 = vst.msk [vmem:[%s2446_s3 + $0xf4] sm:$0xf] %vm1359_vm4, %v1619_v44 }

</bundles_post_ra>
